<compile_context>
chip_gen: v7x
topology: tpu7x:2x2x1
jax: 0.10.0
libtpu: 0.0.40
codegen_flags: <defaults>
</compile_context>

<pallas_src>
import functools

import jax
import jax.numpy as jnp
from jax import lax
from jax.experimental import pallas as pl
from jax.experimental.pallas import tpu as pltpu


def _round_up(x, m):
    return (x + m - 1) // m * m


def _lstm_kernel(x_ref, w_ih_ref, b_ref, w_hh_ref, w_out_ref, b_out_ref,
                 out_ref, gx_ref, *, n_labels):
    """Input projection prologue + LSTM recurrence over T + Linear + log_softmax.

    x_ref    : (T, BT, Ep)  f32   embedded tokens, time-major, padded
    w_ih_ref : (Ep, 4*Hp)   f32
    b_ref    : (1, 4*Hp)    f32   b_ih + b_hh, gate blocks at Hp strides
    w_hh_ref : (Hp, 4*Hp)   bf16  recurrent weights (resident)
    w_out_ref: (Hp, Lp)     f32
    b_out_ref: (1, Lp)      f32
    out_ref  : (BT, Lp)     f32   log-probabilities (padded label lanes masked)
    gx_ref   : (T*BT, 4*Hp) f32   VMEM scratch holding x @ W_ih + b for all steps
    """
    T, BT, Ep = x_ref.shape
    Hp = w_hh_ref.shape[0]

    # ---- prologue: input projection for ALL time steps as ONE MXU matmul ----
    # (no sequential dependence -> off the recurrent critical path; result
    #  never round-trips HBM, it lives in the VMEM scratch gx_ref).
    x_all = x_ref[...].reshape(T * BT, Ep)
    gx_ref[...] = jnp.dot(x_all, w_ih_ref[...],
                          preferred_element_type=jnp.float32) + b_ref[...]

    w_hh = w_hh_ref[...]  # (Hp, 4Hp) bf16, resident in VMEM/vregs

    def step(t, carry):
        h, c = carry  # f32 (BT, Hp)
        row0 = pl.multiple_of(t * BT, BT)
        # Per-step critical path: one (BT,Hp)@(Hp,4Hp) MXU matmul + gate math.
        gates = gx_ref[pl.ds(row0, BT), :] + jnp.dot(
            h.astype(w_hh.dtype), w_hh, preferred_element_type=jnp.float32)
        # PyTorch gate ordering: i, f, g, o (each padded block is Hp wide).
        i_g = jax.nn.sigmoid(gates[:, 0 * Hp:1 * Hp])
        f_g = jax.nn.sigmoid(gates[:, 1 * Hp:2 * Hp])
        g_g = jnp.tanh(gates[:, 2 * Hp:3 * Hp])
        o_g = jax.nn.sigmoid(gates[:, 3 * Hp:4 * Hp])
        c_new = f_g * c + i_g * g_g
        h_new = o_g * jnp.tanh(c_new)
        return h_new, c_new

    h0 = jnp.zeros((BT, Hp), jnp.float32)  # PyTorch default h0 = c0 = 0
    c0 = jnp.zeros((BT, Hp), jnp.float32)
    h_T, _ = lax.fori_loop(0, T, step, (h0, c0), unroll=True)

    # ---- epilogue (once): y = h_T @ W_out + b_out ; log_softmax over labels ----
    y = jnp.dot(h_T, w_out_ref[...],
                preferred_element_type=jnp.float32) + b_out_ref[...]
    col = lax.broadcasted_iota(jnp.int32, y.shape, 1)
    y = jnp.where(col < n_labels, y, -1e30)  # mask padded label lanes
    m = jnp.max(y, axis=-1, keepdims=True)
    lse = m + jnp.log(jnp.sum(jnp.exp(y - m), axis=-1, keepdims=True))
    out_ref[...] = y - lse


def lstm_sentiment_forward(sentence, params):
    """sentence: (B, T) int32 token ids. Returns (B, label_size) log-probs."""
    emb_table = params["embedding"]          # (V, E)
    w_ih = params["w_ih"]                    # (E, 4H)
    w_hh = params["w_hh"]                    # (H, 4H)
    b = params["b"]                          # (1, 4H)  (= b_ih + b_hh)
    w_out = params["w_out"]                  # (H, L)
    b_out = params["b_out"]                  # (1, L)

    B, T = sentence.shape
    E = emb_table.shape[1]
    H = w_hh.shape[0]
    L = w_out.shape[1]

    BT = 8                                   # batch tile = one f32 sublane tile
    Bp = _round_up(max(B, BT), BT)
    Ep = _round_up(E, 128)
    Hp = _round_up(H, 128)
    Lp = _round_up(L, 128)
    Gp = 4 * Hp

    # ---- pad parameters to tile-aligned shapes (gate blocks at Hp strides) ----
    def pad_gate_cols(w, rows_pad):
        rows = w.shape[0]
        out = jnp.zeros((rows_pad, Gp), jnp.float32)
        for g in range(4):
            out = out.at[:rows, g * Hp:g * Hp + H].set(
                w[:, g * H:(g + 1) * H].astype(jnp.float32))
        return out

    w_ih_p = pad_gate_cols(w_ih, Ep)                          # (Ep, 4Hp) f32
    b_p = pad_gate_cols(b, 1)                                 # (1, 4Hp)  f32
    w_hh_p = pad_gate_cols(w_hh, Hp).astype(jnp.bfloat16)     # (Hp, 4Hp) bf16
    w_out_p = jnp.zeros((Hp, Lp), jnp.float32).at[:H, :L].set(w_out)
    b_out_p = jnp.zeros((1, Lp), jnp.float32).at[:, :L].set(b_out)

    # ---- embedding gather (XLA) + time-major padded layout for the kernel ----
    # TODO(synk): the gather itself could be fused into the kernel via scalar-
    # prefetched token ids + manual DMA from the HBM embedding table.
    x = jnp.transpose(emb_table[sentence].astype(jnp.float32), (1, 0, 2))  # (T,B,E)
    x_p = jnp.zeros((T, Bp, Ep), jnp.float32).at[:, :B, :E].set(x)

    kernel = functools.partial(_lstm_kernel, n_labels=L)
    out_p = pl.pallas_call(
        kernel,
        out_shape=jax.ShapeDtypeStruct((Bp, Lp), jnp.float32),
        grid=(Bp // BT,),
        in_specs=[
            pl.BlockSpec((T, BT, Ep), lambda i: (0, i, 0)),   # x, batch tile
            pl.BlockSpec((Ep, Gp), lambda i: (0, 0)),         # W_ih (prologue)
            pl.BlockSpec((1, Gp), lambda i: (0, 0)),          # b_ih + b_hh
            pl.BlockSpec((Hp, Gp), lambda i: (0, 0)),         # W_hh (resident)
            pl.BlockSpec((Hp, Lp), lambda i: (0, 0)),         # W_out (epilogue)
            pl.BlockSpec((1, Lp), lambda i: (0, 0)),          # b_out (epilogue)
        ],
        out_specs=pl.BlockSpec((BT, Lp), lambda i: (i, 0)),   # lane-dense (Lp=128)
        scratch_shapes=[pltpu.VMEM((T * BT, Gp), jnp.float32)],  # gates_x, stays in VMEM
        compiler_params=pltpu.CompilerParams(
            dimension_semantics=("parallel",)),               # batch tiles -> 2 TCs on v7x
    )(x_p, w_ih_p, b_p, w_hh_p, w_out_p, b_out_p)

    return out_p[:B, :L]


def _reference_forward(sentence, params):
    """Pure-JAX f32 reference matching the PyTorch module semantics."""
    emb = params["embedding"]
    w_ih, w_hh, b = params["w_ih"], params["w_hh"], params["b"]
    w_out, b_out = params["w_out"], params["b_out"]
    H = w_hh.shape[0]
    x = jnp.transpose(emb[sentence].astype(jnp.float32), (1, 0, 2))  # (T, B, E)
    B = sentence.shape[0]
    h = jnp.zeros((B, H), jnp.float32)
    c = jnp.zeros((B, H), jnp.float32)
    for t in range(x.shape[0]):
        gates = x[t] @ w_ih + h @ w_hh + b
        i = jax.nn.sigmoid(gates[:, 0 * H:1 * H])
        f = jax.nn.sigmoid(gates[:, 1 * H:2 * H])
        g = jnp.tanh(gates[:, 2 * H:3 * H])
        o = jax.nn.sigmoid(gates[:, 3 * H:4 * H])
        c = f * c + i * g
        h = o * jnp.tanh(c)
    y = h @ w_out + b_out
    return jax.nn.log_softmax(y, axis=-1)


def init_params(key, vocab_size, embedding_dim, hidden_dim, label_size):
    ks = jax.random.split(key, 7)
    scale = 0.1
    embedding = scale * jax.random.normal(ks[0], (vocab_size, embedding_dim), jnp.float32)
    # PyTorch stores weight_ih as (4H, E); we store transposed (E, 4H) for x @ W.
    w_ih = scale * jax.random.normal(ks[1], (embedding_dim, 4 * hidden_dim), jnp.float32)
    w_hh = scale * jax.random.normal(ks[2], (hidden_dim, 4 * hidden_dim), jnp.float32)
    b_ih = scale * jax.random.normal(ks[3], (4 * hidden_dim,), jnp.float32)
    b_hh = scale * jax.random.normal(ks[4], (4 * hidden_dim,), jnp.float32)
    w_out = scale * jax.random.normal(ks[5], (hidden_dim, label_size), jnp.float32)
    b_out = scale * jax.random.normal(ks[6], (label_size,), jnp.float32)
    return {
        "embedding": embedding,
        "w_ih": w_ih,
        "w_hh": w_hh,
        "b": (b_ih + b_hh).reshape(1, -1),
        "w_out": w_out,
        "b_out": b_out.reshape(1, -1),
    }


if __name__ == "__main__":
    # Small, forward-consistent shapes.
    batch = 2
    seq = 8
    embedding_dim = 16
    hidden_dim = 32
    vocab_size = 50
    label_size = 4

    key = jax.random.PRNGKey(0)
    k_param, k_tok = jax.random.split(key)
    params = init_params(k_param, vocab_size, embedding_dim, hidden_dim, label_size)
    sentence = jax.random.randint(k_tok, (batch, seq), 0, vocab_size, dtype=jnp.int32)

    log_probs = lstm_sentiment_forward(sentence, params)
    jax.block_until_ready(log_probs)

    assert log_probs.shape == (batch, label_size)
    # log_softmax rows must (approximately) exponentiate-sum to 1
    assert jnp.allclose(jnp.sum(jnp.exp(log_probs), axis=1), 1.0, atol=1e-4)
    # Match the pure-JAX f32 reference (loose tol: recurrent matmul uses bf16 weights).
    ref = _reference_forward(sentence, params)
    assert jnp.allclose(log_probs, ref, atol=3e-2), (log_probs, ref)
    print("KERNEL_OK")
</pallas_src>

<mosaic_0001>
module attributes {stable_mosaic.version = 11 : i64} {
  func.func @_lstm_kernel(%arg0: i32, %arg1: memref<8x8x128xf32, #tpu.memory_space<vmem>>, %arg2: memref<128x512xf32, #tpu.memory_space<vmem>>, %arg3: memref<1x512xf32, #tpu.memory_space<vmem>>, %arg4: memref<128x512xbf16, #tpu.memory_space<vmem>>, %arg5: memref<128x128xf32, #tpu.memory_space<vmem>>, %arg6: memref<1x128xf32, #tpu.memory_space<vmem>>, %arg7: memref<8x128xf32, #tpu.memory_space<vmem>>, %arg8: memref<64x512xf32, #tpu.memory_space<vmem>>) attributes {dimension_semantics = [#tpu.dimension_semantics<parallel>], iteration_bounds = array<i64: 1>, scalar_prefetch = 0 : i64, scratch_operands = 1 : i64, tpu.core_type = #tpu.core_type<tc>, window_params = [{transform_indices = @transform_0, window_bounds = array<i64: 8, 8, 128>}, {pipeline_mode = #tpu.pipeline_mode<synchronous>, transform_indices = @transform_1, window_bounds = array<i64: 128, 512>}, {pipeline_mode = #tpu.pipeline_mode<synchronous>, transform_indices = @transform_2, window_bounds = array<i64: 1, 512>}, {pipeline_mode = #tpu.pipeline_mode<synchronous>, transform_indices = @transform_3, window_bounds = array<i64: 128, 512>}, {pipeline_mode = #tpu.pipeline_mode<synchronous>, transform_indices = @transform_4, window_bounds = array<i64: 128, 128>}, {pipeline_mode = #tpu.pipeline_mode<synchronous>, transform_indices = @transform_5, window_bounds = array<i64: 1, 128>}, {transform_indices = @transform_6, window_bounds = array<i64: 8, 128>}]} {
    %c0 = arith.constant 0 : index
    %c0_0 = arith.constant 0 : index
    %c0_1 = arith.constant 0 : index
    %0 = vector.load %arg1[%c0, %c0_0, %c0_1] : memref<8x8x128xf32, #tpu.memory_space<vmem>>, vector<8x8x128xf32>
    %1 = vector.shape_cast %0 : vector<8x8x128xf32> to vector<64x128xf32>
    %c0_2 = arith.constant 0 : index
    %c0_3 = arith.constant 0 : index
    %2 = vector.load %arg2[%c0_2, %c0_3] : memref<128x512xf32, #tpu.memory_space<vmem>>, vector<128x512xf32>
    %cst = arith.constant dense<0.000000e+00> : vector<64x512xf32>
    %3 = tpu.matmul %1, %2, %cst {dimension_numbers = #tpu.dot_dimension_numbers<[1], [0], [0], [1], [0, 0, 1, 1], [], []>} : vector<64x128xf32>, vector<128x512xf32>, vector<64x512xf32> -> vector<64x512xf32>
    %c0_4 = arith.constant 0 : index
    %c0_5 = arith.constant 0 : index
    %4 = vector.load %arg3[%c0_4, %c0_5] : memref<1x512xf32, #tpu.memory_space<vmem>>, vector<1x512xf32>
    %5 = vector.broadcast %4 : vector<1x512xf32> to vector<64x512xf32>
    %6 = arith.addf %3, %5 : vector<64x512xf32>
    %c0_6 = arith.constant 0 : index
    %c0_7 = arith.constant 0 : index
    %7 = vector.load %arg8[%c0_6, %c0_7] : memref<64x512xf32, #tpu.memory_space<vmem>>, vector<64x512xf32>
    tpu.vector_store %arg8[%c0_6, %c0_7], %6 {strides = array<i32>} : memref<64x512xf32, #tpu.memory_space<vmem>>, vector<64x512xf32>,
    %c0_8 = arith.constant 0 : index
    %c0_9 = arith.constant 0 : index
    %8 = vector.load %arg4[%c0_8, %c0_9] : memref<128x512xbf16, #tpu.memory_space<vmem>>, vector<128x512xbf16>
    %cst_10 = arith.constant 0.000000e+00 : f32
    %9 = vector.broadcast %cst_10 : f32 to vector<8x128xf32>
    %cst_11 = arith.constant 0.000000e+00 : f32
    %10 = vector.broadcast %cst_11 : f32 to vector<8x128xf32>
    %c0_i32 = arith.constant 0 : i32
    %c8_i32 = arith.constant 8 : i32
    %11 = arith.muli %c0_i32, %c8_i32 : i32
    %12 = tpu.assume_multiple %11, 8 : i32
    %13 = arith.index_cast %12 : i32 to index
    %c0_12 = arith.constant 0 : index
    %14 = vector.load %arg8[%13, %c0_12] : memref<64x512xf32, #tpu.memory_space<vmem>>, vector<8x512xf32>
    %15 = arith.truncf %9 : vector<8x128xf32> to vector<8x128xbf16>
    %cst_13 = arith.constant dense<0.000000e+00> : vector<8x512xf32>
    %16 = tpu.matmul %15, %8, %cst_13 {dimension_numbers = #tpu.dot_dimension_numbers<[1], [0], [0], [1], [0, 0, 1, 1], [], []>} : vector<8x128xbf16>, vector<128x512xbf16>, vector<8x512xf32> -> vector<8x512xf32>
    %17 = arith.addf %14, %16 : vector<8x512xf32>
    %18 = vector.extract_strided_slice %17 {offsets = [0, 0], sizes = [8, 128], strides = [1, 1]} : vector<8x512xf32> to vector<8x128xf32>
    %19 = arith.negf %18 : vector<8x128xf32>
    %20 = math.exp %19 : vector<8x128xf32>
    %cst_14 = arith.constant 1.000000e+00 : f32
    %21 = vector.broadcast %cst_14 : f32 to vector<8x128xf32>
    %22 = arith.addf %21, %20 : vector<8x128xf32>
    %23 = arith.divf %21, %22 : vector<8x128xf32>
    %24 = vector.extract_strided_slice %17 {offsets = [0, 128], sizes = [8, 128], strides = [1, 1]} : vector<8x512xf32> to vector<8x128xf32>
    %25 = arith.negf %24 : vector<8x128xf32>
    %26 = math.exp %25 : vector<8x128xf32>
    %cst_15 = arith.constant 1.000000e+00 : f32
    %27 = vector.broadcast %cst_15 : f32 to vector<8x128xf32>
    %28 = arith.addf %27, %26 : vector<8x128xf32>
    %29 = arith.divf %27, %28 : vector<8x128xf32>
    %30 = vector.extract_strided_slice %17 {offsets = [0, 256], sizes = [8, 128], strides = [1, 1]} : vector<8x512xf32> to vector<8x128xf32>
    %31 = math.tanh %30 : vector<8x128xf32>
    %32 = vector.extract_strided_slice %17 {offsets = [0, 384], sizes = [8, 128], strides = [1, 1]} : vector<8x512xf32> to vector<8x128xf32>
    %33 = arith.negf %32 : vector<8x128xf32>
    %34 = math.exp %33 : vector<8x128xf32>
    %cst_16 = arith.constant 1.000000e+00 : f32
    %35 = vector.broadcast %cst_16 : f32 to vector<8x128xf32>
    %36 = arith.addf %35, %34 : vector<8x128xf32>
    %37 = arith.divf %35, %36 : vector<8x128xf32>
    %38 = arith.mulf %29, %10 : vector<8x128xf32>
    %39 = arith.mulf %23, %31 : vector<8x128xf32>
    %40 = arith.addf %38, %39 : vector<8x128xf32>
    %41 = math.tanh %40 : vector<8x128xf32>
    %42 = arith.mulf %37, %41 : vector<8x128xf32>
    %c1_i32 = arith.constant 1 : i32
    %c8_i32_17 = arith.constant 8 : i32
    %43 = arith.muli %c1_i32, %c8_i32_17 : i32
    %44 = tpu.assume_multiple %43, 8 : i32
    %45 = arith.index_cast %44 : i32 to index
    %c0_18 = arith.constant 0 : index
    %46 = vector.load %arg8[%45, %c0_18] : memref<64x512xf32, #tpu.memory_space<vmem>>, vector<8x512xf32>
    %47 = arith.truncf %42 : vector<8x128xf32> to vector<8x128xbf16>
    %cst_19 = arith.constant dense<0.000000e+00> : vector<8x512xf32>
    %48 = tpu.matmul %47, %8, %cst_19 {dimension_numbers = #tpu.dot_dimension_numbers<[1], [0], [0], [1], [0, 0, 1, 1], [], []>} : vector<8x128xbf16>, vector<128x512xbf16>, vector<8x512xf32> -> vector<8x512xf32>
    %49 = arith.addf %46, %48 : vector<8x512xf32>
    %50 = vector.extract_strided_slice %49 {offsets = [0, 0], sizes = [8, 128], strides = [1, 1]} : vector<8x512xf32> to vector<8x128xf32>
    %51 = arith.negf %50 : vector<8x128xf32>
    %52 = math.exp %51 : vector<8x128xf32>
    %cst_20 = arith.constant 1.000000e+00 : f32
    %53 = vector.broadcast %cst_20 : f32 to vector<8x128xf32>
    %54 = arith.addf %53, %52 : vector<8x128xf32>
    %55 = arith.divf %53, %54 : vector<8x128xf32>
    %56 = vector.extract_strided_slice %49 {offsets = [0, 128], sizes = [8, 128], strides = [1, 1]} : vector<8x512xf32> to vector<8x128xf32>
    %57 = arith.negf %56 : vector<8x128xf32>
    %58 = math.exp %57 : vector<8x128xf32>
    %cst_21 = arith.constant 1.000000e+00 : f32
    %59 = vector.broadcast %cst_21 : f32 to vector<8x128xf32>
    %60 = arith.addf %59, %58 : vector<8x128xf32>
    %61 = arith.divf %59, %60 : vector<8x128xf32>
    %62 = vector.extract_strided_slice %49 {offsets = [0, 256], sizes = [8, 128], strides = [1, 1]} : vector<8x512xf32> to vector<8x128xf32>
    %63 = math.tanh %62 : vector<8x128xf32>
    %64 = vector.extract_strided_slice %49 {offsets = [0, 384], sizes = [8, 128], strides = [1, 1]} : vector<8x512xf32> to vector<8x128xf32>
    %65 = arith.negf %64 : vector<8x128xf32>
    %66 = math.exp %65 : vector<8x128xf32>
    %cst_22 = arith.constant 1.000000e+00 : f32
    %67 = vector.broadcast %cst_22 : f32 to vector<8x128xf32>
    %68 = arith.addf %67, %66 : vector<8x128xf32>
    %69 = arith.divf %67, %68 : vector<8x128xf32>
    %70 = arith.mulf %61, %40 : vector<8x128xf32>
    %71 = arith.mulf %55, %63 : vector<8x128xf32>
    %72 = arith.addf %70, %71 : vector<8x128xf32>
    %73 = math.tanh %72 : vector<8x128xf32>
    %74 = arith.mulf %69, %73 : vector<8x128xf32>
    %c2_i32 = arith.constant 2 : i32
    %c8_i32_23 = arith.constant 8 : i32
    %75 = arith.muli %c2_i32, %c8_i32_23 : i32
    %76 = tpu.assume_multiple %75, 8 : i32
    %77 = arith.index_cast %76 : i32 to index
    %c0_24 = arith.constant 0 : index
    %78 = vector.load %arg8[%77, %c0_24] : memref<64x512xf32, #tpu.memory_space<vmem>>, vector<8x512xf32>
    %79 = arith.truncf %74 : vector<8x128xf32> to vector<8x128xbf16>
    %cst_25 = arith.constant dense<0.000000e+00> : vector<8x512xf32>
    %80 = tpu.matmul %79, %8, %cst_25 {dimension_numbers = #tpu.dot_dimension_numbers<[1], [0], [0], [1], [0, 0, 1, 1], [], []>} : vector<8x128xbf16>, vector<128x512xbf16>, vector<8x512xf32> -> vector<8x512xf32>
    %81 = arith.addf %78, %80 : vector<8x512xf32>
    %82 = vector.extract_strided_slice %81 {offsets = [0, 0], sizes = [8, 128], strides = [1, 1]} : vector<8x512xf32> to vector<8x128xf32>
    %83 = arith.negf %82 : vector<8x128xf32>
    %84 = math.exp %83 : vector<8x128xf32>
    %cst_26 = arith.constant 1.000000e+00 : f32
    %85 = vector.broadcast %cst_26 : f32 to vector<8x128xf32>
    %86 = arith.addf %85, %84 : vector<8x128xf32>
    %87 = arith.divf %85, %86 : vector<8x128xf32>
    %88 = vector.extract_strided_slice %81 {offsets = [0, 128], sizes = [8, 128], strides = [1, 1]} : vector<8x512xf32> to vector<8x128xf32>
    %89 = arith.negf %88 : vector<8x128xf32>
    %90 = math.exp %89 : vector<8x128xf32>
    %cst_27 = arith.constant 1.000000e+00 : f32
    %91 = vector.broadcast %cst_27 : f32 to vector<8x128xf32>
    %92 = arith.addf %91, %90 : vector<8x128xf32>
    %93 = arith.divf %91, %92 : vector<8x128xf32>
    %94 = vector.extract_strided_slice %81 {offsets = [0, 256], sizes = [8, 128], strides = [1, 1]} : vector<8x512xf32> to vector<8x128xf32>
    %95 = math.tanh %94 : vector<8x128xf32>
    %96 = vector.extract_strided_slice %81 {offsets = [0, 384], sizes = [8, 128], strides = [1, 1]} : vector<8x512xf32> to vector<8x128xf32>
    %97 = arith.negf %96 : vector<8x128xf32>
    %98 = math.exp %97 : vector<8x128xf32>
    %cst_28 = arith.constant 1.000000e+00 : f32
    %99 = vector.broadcast %cst_28 : f32 to vector<8x128xf32>
    %100 = arith.addf %99, %98 : vector<8x128xf32>
    %101 = arith.divf %99, %100 : vector<8x128xf32>
    %102 = arith.mulf %93, %72 : vector<8x128xf32>
    %103 = arith.mulf %87, %95 : vector<8x128xf32>
    %104 = arith.addf %102, %103 : vector<8x128xf32>
    %105 = math.tanh %104 : vector<8x128xf32>
    %106 = arith.mulf %101, %105 : vector<8x128xf32>
    %c3_i32 = arith.constant 3 : i32
    %c8_i32_29 = arith.constant 8 : i32
    %107 = arith.muli %c3_i32, %c8_i32_29 : i32
    %108 = tpu.assume_multiple %107, 8 : i32
    %109 = arith.index_cast %108 : i32 to index
    %c0_30 = arith.constant 0 : index
    %110 = vector.load %arg8[%109, %c0_30] : memref<64x512xf32, #tpu.memory_space<vmem>>, vector<8x512xf32>
    %111 = arith.truncf %106 : vector<8x128xf32> to vector<8x128xbf16>
    %cst_31 = arith.constant dense<0.000000e+00> : vector<8x512xf32>
    %112 = tpu.matmul %111, %8, %cst_31 {dimension_numbers = #tpu.dot_dimension_numbers<[1], [0], [0], [1], [0, 0, 1, 1], [], []>} : vector<8x128xbf16>, vector<128x512xbf16>, vector<8x512xf32> -> vector<8x512xf32>
    %113 = arith.addf %110, %112 : vector<8x512xf32>
    %114 = vector.extract_strided_slice %113 {offsets = [0, 0], sizes = [8, 128], strides = [1, 1]} : vector<8x512xf32> to vector<8x128xf32>
    %115 = arith.negf %114 : vector<8x128xf32>
    %116 = math.exp %115 : vector<8x128xf32>
    %cst_32 = arith.constant 1.000000e+00 : f32
    %117 = vector.broadcast %cst_32 : f32 to vector<8x128xf32>
    %118 = arith.addf %117, %116 : vector<8x128xf32>
    %119 = arith.divf %117, %118 : vector<8x128xf32>
    %120 = vector.extract_strided_slice %113 {offsets = [0, 128], sizes = [8, 128], strides = [1, 1]} : vector<8x512xf32> to vector<8x128xf32>
    %121 = arith.negf %120 : vector<8x128xf32>
    %122 = math.exp %121 : vector<8x128xf32>
    %cst_33 = arith.constant 1.000000e+00 : f32
    %123 = vector.broadcast %cst_33 : f32 to vector<8x128xf32>
    %124 = arith.addf %123, %122 : vector<8x128xf32>
    %125 = arith.divf %123, %124 : vector<8x128xf32>
    %126 = vector.extract_strided_slice %113 {offsets = [0, 256], sizes = [8, 128], strides = [1, 1]} : vector<8x512xf32> to vector<8x128xf32>
    %127 = math.tanh %126 : vector<8x128xf32>
    %128 = vector.extract_strided_slice %113 {offsets = [0, 384], sizes = [8, 128], strides = [1, 1]} : vector<8x512xf32> to vector<8x128xf32>
    %129 = arith.negf %128 : vector<8x128xf32>
    %130 = math.exp %129 : vector<8x128xf32>
    %cst_34 = arith.constant 1.000000e+00 : f32
    %131 = vector.broadcast %cst_34 : f32 to vector<8x128xf32>
    %132 = arith.addf %131, %130 : vector<8x128xf32>
    %133 = arith.divf %131, %132 : vector<8x128xf32>
    %134 = arith.mulf %125, %104 : vector<8x128xf32>
    %135 = arith.mulf %119, %127 : vector<8x128xf32>
    %136 = arith.addf %134, %135 : vector<8x128xf32>
    %137 = math.tanh %136 : vector<8x128xf32>
    %138 = arith.mulf %133, %137 : vector<8x128xf32>
    %c4_i32 = arith.constant 4 : i32
    %c8_i32_35 = arith.constant 8 : i32
    %139 = arith.muli %c4_i32, %c8_i32_35 : i32
    %140 = tpu.assume_multiple %139, 8 : i32
    %141 = arith.index_cast %140 : i32 to index
    %c0_36 = arith.constant 0 : index
    %142 = vector.load %arg8[%141, %c0_36] : memref<64x512xf32, #tpu.memory_space<vmem>>, vector<8x512xf32>
    %143 = arith.truncf %138 : vector<8x128xf32> to vector<8x128xbf16>
    %cst_37 = arith.constant dense<0.000000e+00> : vector<8x512xf32>
    %144 = tpu.matmul %143, %8, %cst_37 {dimension_numbers = #tpu.dot_dimension_numbers<[1], [0], [0], [1], [0, 0, 1, 1], [], []>} : vector<8x128xbf16>, vector<128x512xbf16>, vector<8x512xf32> -> vector<8x512xf32>
    %145 = arith.addf %142, %144 : vector<8x512xf32>
    %146 = vector.extract_strided_slice %145 {offsets = [0, 0], sizes = [8, 128], strides = [1, 1]} : vector<8x512xf32> to vector<8x128xf32>
    %147 = arith.negf %146 : vector<8x128xf32>
    %148 = math.exp %147 : vector<8x128xf32>
    %cst_38 = arith.constant 1.000000e+00 : f32
    %149 = vector.broadcast %cst_38 : f32 to vector<8x128xf32>
    %150 = arith.addf %149, %148 : vector<8x128xf32>
    %151 = arith.divf %149, %150 : vector<8x128xf32>
    %152 = vector.extract_strided_slice %145 {offsets = [0, 128], sizes = [8, 128], strides = [1, 1]} : vector<8x512xf32> to vector<8x128xf32>
    %153 = arith.negf %152 : vector<8x128xf32>
    %154 = math.exp %153 : vector<8x128xf32>
    %cst_39 = arith.constant 1.000000e+00 : f32
    %155 = vector.broadcast %cst_39 : f32 to vector<8x128xf32>
    %156 = arith.addf %155, %154 : vector<8x128xf32>
    %157 = arith.divf %155, %156 : vector<8x128xf32>
    %158 = vector.extract_strided_slice %145 {offsets = [0, 256], sizes = [8, 128], strides = [1, 1]} : vector<8x512xf32> to vector<8x128xf32>
    %159 = math.tanh %158 : vector<8x128xf32>
    %160 = vector.extract_strided_slice %145 {offsets = [0, 384], sizes = [8, 128], strides = [1, 1]} : vector<8x512xf32> to vector<8x128xf32>
    %161 = arith.negf %160 : vector<8x128xf32>
    %162 = math.exp %161 : vector<8x128xf32>
    %cst_40 = arith.constant 1.000000e+00 : f32
    %163 = vector.broadcast %cst_40 : f32 to vector<8x128xf32>
    %164 = arith.addf %163, %162 : vector<8x128xf32>
    %165 = arith.divf %163, %164 : vector<8x128xf32>
    %166 = arith.mulf %157, %136 : vector<8x128xf32>
    %167 = arith.mulf %151, %159 : vector<8x128xf32>
    %168 = arith.addf %166, %167 : vector<8x128xf32>
    %169 = math.tanh %168 : vector<8x128xf32>
    %170 = arith.mulf %165, %169 : vector<8x128xf32>
    %c5_i32 = arith.constant 5 : i32
    %c8_i32_41 = arith.constant 8 : i32
    %171 = arith.muli %c5_i32, %c8_i32_41 : i32
    %172 = tpu.assume_multiple %171, 8 : i32
    %173 = arith.index_cast %172 : i32 to index
    %c0_42 = arith.constant 0 : index
    %174 = vector.load %arg8[%173, %c0_42] : memref<64x512xf32, #tpu.memory_space<vmem>>, vector<8x512xf32>
    %175 = arith.truncf %170 : vector<8x128xf32> to vector<8x128xbf16>
    %cst_43 = arith.constant dense<0.000000e+00> : vector<8x512xf32>
    %176 = tpu.matmul %175, %8, %cst_43 {dimension_numbers = #tpu.dot_dimension_numbers<[1], [0], [0], [1], [0, 0, 1, 1], [], []>} : vector<8x128xbf16>, vector<128x512xbf16>, vector<8x512xf32> -> vector<8x512xf32>
    %177 = arith.addf %174, %176 : vector<8x512xf32>
    %178 = vector.extract_strided_slice %177 {offsets = [0, 0], sizes = [8, 128], strides = [1, 1]} : vector<8x512xf32> to vector<8x128xf32>
    %179 = arith.negf %178 : vector<8x128xf32>
    %180 = math.exp %179 : vector<8x128xf32>
    %cst_44 = arith.constant 1.000000e+00 : f32
    %181 = vector.broadcast %cst_44 : f32 to vector<8x128xf32>
    %182 = arith.addf %181, %180 : vector<8x128xf32>
    %183 = arith.divf %181, %182 : vector<8x128xf32>
    %184 = vector.extract_strided_slice %177 {offsets = [0, 128], sizes = [8, 128], strides = [1, 1]} : vector<8x512xf32> to vector<8x128xf32>
    %185 = arith.negf %184 : vector<8x128xf32>
    %186 = math.exp %185 : vector<8x128xf32>
    %cst_45 = arith.constant 1.000000e+00 : f32
    %187 = vector.broadcast %cst_45 : f32 to vector<8x128xf32>
    %188 = arith.addf %187, %186 : vector<8x128xf32>
    %189 = arith.divf %187, %188 : vector<8x128xf32>
    %190 = vector.extract_strided_slice %177 {offsets = [0, 256], sizes = [8, 128], strides = [1, 1]} : vector<8x512xf32> to vector<8x128xf32>
    %191 = math.tanh %190 : vector<8x128xf32>
    %192 = vector.extract_strided_slice %177 {offsets = [0, 384], sizes = [8, 128], strides = [1, 1]} : vector<8x512xf32> to vector<8x128xf32>
    %193 = arith.negf %192 : vector<8x128xf32>
    %194 = math.exp %193 : vector<8x128xf32>
    %cst_46 = arith.constant 1.000000e+00 : f32
    %195 = vector.broadcast %cst_46 : f32 to vector<8x128xf32>
    %196 = arith.addf %195, %194 : vector<8x128xf32>
    %197 = arith.divf %195, %196 : vector<8x128xf32>
    %198 = arith.mulf %189, %168 : vector<8x128xf32>
    %199 = arith.mulf %183, %191 : vector<8x128xf32>
    %200 = arith.addf %198, %199 : vector<8x128xf32>
    %201 = math.tanh %200 : vector<8x128xf32>
    %202 = arith.mulf %197, %201 : vector<8x128xf32>
    %c6_i32 = arith.constant 6 : i32
    %c8_i32_47 = arith.constant 8 : i32
    %203 = arith.muli %c6_i32, %c8_i32_47 : i32
    %204 = tpu.assume_multiple %203, 8 : i32
    %205 = arith.index_cast %204 : i32 to index
    %c0_48 = arith.constant 0 : index
    %206 = vector.load %arg8[%205, %c0_48] : memref<64x512xf32, #tpu.memory_space<vmem>>, vector<8x512xf32>
    %207 = arith.truncf %202 : vector<8x128xf32> to vector<8x128xbf16>
    %cst_49 = arith.constant dense<0.000000e+00> : vector<8x512xf32>
    %208 = tpu.matmul %207, %8, %cst_49 {dimension_numbers = #tpu.dot_dimension_numbers<[1], [0], [0], [1], [0, 0, 1, 1], [], []>} : vector<8x128xbf16>, vector<128x512xbf16>, vector<8x512xf32> -> vector<8x512xf32>
    %209 = arith.addf %206, %208 : vector<8x512xf32>
    %210 = vector.extract_strided_slice %209 {offsets = [0, 0], sizes = [8, 128], strides = [1, 1]} : vector<8x512xf32> to vector<8x128xf32>
    %211 = arith.negf %210 : vector<8x128xf32>
    %212 = math.exp %211 : vector<8x128xf32>
    %cst_50 = arith.constant 1.000000e+00 : f32
    %213 = vector.broadcast %cst_50 : f32 to vector<8x128xf32>
    %214 = arith.addf %213, %212 : vector<8x128xf32>
    %215 = arith.divf %213, %214 : vector<8x128xf32>
    %216 = vector.extract_strided_slice %209 {offsets = [0, 128], sizes = [8, 128], strides = [1, 1]} : vector<8x512xf32> to vector<8x128xf32>
    %217 = arith.negf %216 : vector<8x128xf32>
    %218 = math.exp %217 : vector<8x128xf32>
    %cst_51 = arith.constant 1.000000e+00 : f32
    %219 = vector.broadcast %cst_51 : f32 to vector<8x128xf32>
    %220 = arith.addf %219, %218 : vector<8x128xf32>
    %221 = arith.divf %219, %220 : vector<8x128xf32>
    %222 = vector.extract_strided_slice %209 {offsets = [0, 256], sizes = [8, 128], strides = [1, 1]} : vector<8x512xf32> to vector<8x128xf32>
    %223 = math.tanh %222 : vector<8x128xf32>
    %224 = vector.extract_strided_slice %209 {offsets = [0, 384], sizes = [8, 128], strides = [1, 1]} : vector<8x512xf32> to vector<8x128xf32>
    %225 = arith.negf %224 : vector<8x128xf32>
    %226 = math.exp %225 : vector<8x128xf32>
    %cst_52 = arith.constant 1.000000e+00 : f32
    %227 = vector.broadcast %cst_52 : f32 to vector<8x128xf32>
    %228 = arith.addf %227, %226 : vector<8x128xf32>
    %229 = arith.divf %227, %228 : vector<8x128xf32>
    %230 = arith.mulf %221, %200 : vector<8x128xf32>
    %231 = arith.mulf %215, %223 : vector<8x128xf32>
    %232 = arith.addf %230, %231 : vector<8x128xf32>
    %233 = math.tanh %232 : vector<8x128xf32>
    %234 = arith.mulf %229, %233 : vector<8x128xf32>
    %c7_i32 = arith.constant 7 : i32
    %c8_i32_53 = arith.constant 8 : i32
    %235 = arith.muli %c7_i32, %c8_i32_53 : i32
    %236 = tpu.assume_multiple %235, 8 : i32
    %237 = arith.index_cast %236 : i32 to index
    %c0_54 = arith.constant 0 : index
    %238 = vector.load %arg8[%237, %c0_54] : memref<64x512xf32, #tpu.memory_space<vmem>>, vector<8x512xf32>
    %239 = arith.truncf %234 : vector<8x128xf32> to vector<8x128xbf16>
    %cst_55 = arith.constant dense<0.000000e+00> : vector<8x512xf32>
    %240 = tpu.matmul %239, %8, %cst_55 {dimension_numbers = #tpu.dot_dimension_numbers<[1], [0], [0], [1], [0, 0, 1, 1], [], []>} : vector<8x128xbf16>, vector<128x512xbf16>, vector<8x512xf32> -> vector<8x512xf32>
    %241 = arith.addf %238, %240 : vector<8x512xf32>
    %242 = vector.extract_strided_slice %241 {offsets = [0, 0], sizes = [8, 128], strides = [1, 1]} : vector<8x512xf32> to vector<8x128xf32>
    %243 = arith.negf %242 : vector<8x128xf32>
    %244 = math.exp %243 : vector<8x128xf32>
    %cst_56 = arith.constant 1.000000e+00 : f32
    %245 = vector.broadcast %cst_56 : f32 to vector<8x128xf32>
    %246 = arith.addf %245, %244 : vector<8x128xf32>
    %247 = arith.divf %245, %246 : vector<8x128xf32>
    %248 = vector.extract_strided_slice %241 {offsets = [0, 128], sizes = [8, 128], strides = [1, 1]} : vector<8x512xf32> to vector<8x128xf32>
    %249 = arith.negf %248 : vector<8x128xf32>
    %250 = math.exp %249 : vector<8x128xf32>
    %cst_57 = arith.constant 1.000000e+00 : f32
    %251 = vector.broadcast %cst_57 : f32 to vector<8x128xf32>
    %252 = arith.addf %251, %250 : vector<8x128xf32>
    %253 = arith.divf %251, %252 : vector<8x128xf32>
    %254 = vector.extract_strided_slice %241 {offsets = [0, 256], sizes = [8, 128], strides = [1, 1]} : vector<8x512xf32> to vector<8x128xf32>
    %255 = math.tanh %254 : vector<8x128xf32>
    %256 = vector.extract_strided_slice %241 {offsets = [0, 384], sizes = [8, 128], strides = [1, 1]} : vector<8x512xf32> to vector<8x128xf32>
    %257 = arith.negf %256 : vector<8x128xf32>
    %258 = math.exp %257 : vector<8x128xf32>
    %cst_58 = arith.constant 1.000000e+00 : f32
    %259 = vector.broadcast %cst_58 : f32 to vector<8x128xf32>
    %260 = arith.addf %259, %258 : vector<8x128xf32>
    %261 = arith.divf %259, %260 : vector<8x128xf32>
    %262 = arith.mulf %253, %232 : vector<8x128xf32>
    %263 = arith.mulf %247, %255 : vector<8x128xf32>
    %264 = arith.addf %262, %263 : vector<8x128xf32>
    %265 = math.tanh %264 : vector<8x128xf32>
    %266 = arith.mulf %261, %265 : vector<8x128xf32>
    %c8_i32_59 = arith.constant 8 : i32
    %c0_60 = arith.constant 0 : index
    %c0_61 = arith.constant 0 : index
    %267 = vector.load %arg5[%c0_60, %c0_61] : memref<128x128xf32, #tpu.memory_space<vmem>>, vector<128x128xf32>
    %cst_62 = arith.constant dense<0.000000e+00> : vector<8x128xf32>
    %268 = tpu.matmul %266, %267, %cst_62 {dimension_numbers = #tpu.dot_dimension_numbers<[1], [0], [0], [1], [0, 0, 1, 1], [], []>} : vector<8x128xf32>, vector<128x128xf32>, vector<8x128xf32> -> vector<8x128xf32>
    %c0_63 = arith.constant 0 : index
    %c0_64 = arith.constant 0 : index
    %269 = vector.load %arg6[%c0_63, %c0_64] : memref<1x128xf32, #tpu.memory_space<vmem>>, vector<1x128xf32>
    %270 = vector.broadcast %269 : vector<1x128xf32> to vector<8x128xf32>
    %271 = arith.addf %268, %270 : vector<8x128xf32>
    %272 = tpu.iota {dimensions = array<i32: 1>} : vector<8x128xi32>
    %c4_i32_65 = arith.constant 4 : i32
    %273 = vector.broadcast %c4_i32_65 : i32 to vector<8x128xi32>
    %274 = arith.cmpi slt, %272, %273 : vector<8x128xi32>
    %cst_66 = arith.constant -1.000000e+30 : f32
    %275 = vector.broadcast %cst_66 : f32 to vector<8x128xf32>
    %276 = arith.select %274, %271, %275 : vector<8x128xi1>, vector<8x128xf32>
    %cst_67 = arith.constant dense<0xFF800000> : vector<8xf32>
    %277 = vector.multi_reduction <maximumf>, %276, %cst_67 [1] : vector<8x128xf32> to vector<8xf32>
    %278 = vector.shape_cast %277 : vector<8xf32> to vector<8x1xf32>
    %279 = vector.broadcast %278 : vector<8x1xf32> to vector<8x128xf32>
    %280 = arith.subf %276, %279 : vector<8x128xf32>
    %281 = math.exp %280 : vector<8x128xf32>
    %cst_68 = arith.constant dense<0.000000e+00> : vector<8xf32>
    %282 = vector.multi_reduction <add>, %281, %cst_68 [1] : vector<8x128xf32> to vector<8xf32>
    %283 = vector.shape_cast %282 : vector<8xf32> to vector<8x1xf32>
    %284 = math.log %283 : vector<8x1xf32>
    %285 = arith.addf %278, %284 : vector<8x1xf32>
    %286 = vector.broadcast %285 : vector<8x1xf32> to vector<8x128xf32>
    %287 = arith.subf %276, %286 : vector<8x128xf32>
    %c0_69 = arith.constant 0 : index
    %c0_70 = arith.constant 0 : index
    %288 = vector.load %arg7[%c0_69, %c0_70] : memref<8x128xf32, #tpu.memory_space<vmem>>, vector<8x128xf32>
    tpu.vector_store %arg7[%c0_69, %c0_70], %287 {strides = array<i32>} : memref<8x128xf32, #tpu.memory_space<vmem>>, vector<8x128xf32>,
    return
  }
  func.func @transform_0(%arg0: i32) -> (i32, i32, i32) {
    %c0_i32 = arith.constant 0 : i32
    %c0_i32_0 = arith.constant 0 : i32
    %c0_i32_1 = arith.constant 0 : i32
    return %c0_i32, %arg0, %c0_i32_0 : i32, i32, i32
  }
  func.func @transform_1(%arg0: i32) -> (i32, i32) {
    %c0_i32 = arith.constant 0 : i32
    %c0_i32_0 = arith.constant 0 : i32
    %c0_i32_1 = arith.constant 0 : i32
    return %c0_i32, %c0_i32_0 : i32, i32
  }
  func.func @transform_2(%arg0: i32) -> (i32, i32) {
    %c0_i32 = arith.constant 0 : i32
    %c0_i32_0 = arith.constant 0 : i32
    %c0_i32_1 = arith.constant 0 : i32
    return %c0_i32, %c0_i32_0 : i32, i32
  }
  func.func @transform_3(%arg0: i32) -> (i32, i32) {
    %c0_i32 = arith.constant 0 : i32
    %c0_i32_0 = arith.constant 0 : i32
    %c0_i32_1 = arith.constant 0 : i32
    return %c0_i32, %c0_i32_0 : i32, i32
  }
  func.func @transform_4(%arg0: i32) -> (i32, i32) {
    %c0_i32 = arith.constant 0 : i32
    %c0_i32_0 = arith.constant 0 : i32
    %c0_i32_1 = arith.constant 0 : i32
    return %c0_i32, %c0_i32_0 : i32, i32
  }
  func.func @transform_5(%arg0: i32) -> (i32, i32) {
    %c0_i32 = arith.constant 0 : i32
    %c0_i32_0 = arith.constant 0 : i32
    %c0_i32_1 = arith.constant 0 : i32
    return %c0_i32, %c0_i32_0 : i32, i32
  }
  func.func @transform_6(%arg0: i32) -> (i32, i32) {
    %c0_i32 = arith.constant 0 : i32
    %c0_i32_0 = arith.constant 0 : i32
    return %arg0, %c0_i32 : i32, i32
  }
}

</mosaic_0001>

<bundles_post_ra>
// kernel: tpu_custom_call.1
= control target key start
LH: loop header
LB: loop body
LE: loop exit
PB: predicated region body
PF: predicated region fallthrough
CT: control target
= control target key end

     0   :  { %11 = vsyncpa [#allocation4], 0  ;;  %s2888_s0 = inlined_call_operand.hbm [shape: f32[8,8,128], index: 0, kind: input, shape index: {}]   ;;  %s2889_s1 = inlined_call_operand.hbm [shape: f32[128,512], index: 1, kind: input, shape index: {}]   ;;  %s2890_s2 = inlined_call_operand.vmem [shape: f32[1,512], index: 2, kind: input, shape index: {}]   ;;  %s2891_s3 = inlined_call_operand.hbm [shape: bf16[128,512], index: 3, kind: input, shape index: {}]   ;;  %s2892_s4 = inlined_call_operand.hbm [shape: f32[128,128], index: 4, kind: input, shape index: {}]   ;;  %s2893_s5 = inlined_call_operand.vmem [shape: f32[1,128], index: 5, kind: input, shape index: {}]   ;;  %s2894_s6 = inlined_call_operand.hbm [shape: f32[8,128], index: 6, kind: output, shape index: {}]  }
   0x1   :  { %12 = vsyncpa [#allocation7], 0 }
   0x2   :  { %13 = vsyncpa [#allocation10], 0 }
   0x3   :  { %14 = vsyncpa [#allocation5], 0  ;;  %s2242_s21 = smov [#allocation6]   ;;  %s2124_s25 = scalar_lea.hbm %s2889_s1, 8192 }
   0x4   :  { %s32_s22 = sshll.u32 %s2242_s21, 4  ;;  %p2125_p0 = scmp.ne.s32.totalorder %s2889_s1, %s2124_s25  ;;  %s33_s22 = int_to_ptr.vmem [resolvable:$true] %s32_s22 }
   0x5   :  { %p2128_p1 = scmp.lt.u32.totalorder %s2124_s25, %s2889_s1 }
   0x7   :  { %p2130_p2 = pnand %p2128_p1, %p2125_p0 }
   0x9   :  { %2133 = shalt.err (!%p2130_p2)
}
   0xa   :  { %s2134_s30 = scalar_lea.vmem %s33_s22, 8192  ;;  %p2139_p4 = scmp.lt.s32.totalorder %s33_s22, %s33_s22 }
   0xb   :  { %p2135_p3 = scmp.ne.s32.totalorder %s33_s22, %s2134_s30  ;;  %p2140_p5 = scmp.lt.s32.totalorder %s2134_s30, %s2134_s30 }
   0xd   :  { %p2141_p6 = por %p2140_p5, %p2139_p4 }
   0xf   :  { %p2142_p7 = pnand %p2141_p6, %p2135_p3 }
  0x11   :  { %2145 = shalt.err (!%p2142_p7)
}
  0x12   :  { %s2243_s7 = smov 512   ;;  %s2244_s8 = smov 32  }
  0x13   :  { %38 = dma.hbm_to_vmem [thread:$0]  %s2889_s1, 8192, %s33_s22, [#allocation7], %s2243_s7, %s2243_s7, %s2244_s8  }
  0x14   :  { %s2245_s11 = smov [#allocation3]   ;;  %s2146_s15 = scalar_lea.hbm %s2888_s0, 1024 }
  0x15   :  { %s20_s12 = sshll.u32 %s2245_s11, 4  ;;  %p2147_p8 = scmp.ne.s32.totalorder %s2888_s0, %s2146_s15  ;;  %s21_s12 = int_to_ptr.vmem [resolvable:$true] %s20_s12 }
  0x16   :  { %p2150_p9 = scmp.lt.u32.totalorder %s2146_s15, %s2888_s0 }
  0x18   :  { %p2152_p10 = pnand %p2150_p9, %p2147_p8 }
  0x1a   :  { %2155 = shalt.err (!%p2152_p10)
}
  0x1b   :  { %s2156_s20 = scalar_lea.vmem %s21_s12, 1024  ;;  %p2161_p12 = scmp.lt.s32.totalorder %s21_s12, %s21_s12 }
  0x1c   :  { %p2157_p11 = scmp.ne.s32.totalorder %s21_s12, %s2156_s20  ;;  %p2162_p13 = scmp.lt.s32.totalorder %s2156_s20, %s2156_s20 }
  0x1e   :  { %p2163_p0 = por %p2162_p13, %p2161_p12 }
  0x20   :  { %p2164_p1 = pnand %p2163_p0, %p2157_p11 }
  0x22   :  { %2167 = shalt.err (!%p2164_p1)
}
  0x23   :  { %s2246_s1 = smov 128   ;;  %s2247_s21 = smov 8  }
  0x24   :  { %26 = dma.hbm_to_vmem [thread:$0]  %s2888_s0, 1024, %s21_s12, [#allocation4], %s2246_s1, %s2246_s1, %s2247_s21  }
  0x25   :  { %s2248_s24 = smov [#allocation8]   ;;  %s2168_s28 = scalar_lea.hbm %s2891_s3, 4096 }
  0x26   :  { %s46_s25 = sshll.u32 %s2248_s24, 4  ;;  %p2169_p2 = scmp.ne.s32.totalorder %s2891_s3, %s2168_s28  ;;  %s47_s25 = int_to_ptr.vmem [resolvable:$true] %s46_s25 }
  0x27   :  { %p2172_p3 = scmp.lt.u32.totalorder %s2168_s28, %s2891_s3 }
  0x29   :  { %p2174_p4 = pnand %p2172_p3, %p2169_p2 }
  0x2b   :  { %2177 = shalt.err (!%p2174_p4)
}
  0x2c   :  { %s2178_s9 = scalar_lea.vmem %s47_s25, 4096  ;;  %p2183_p6 = scmp.lt.s32.totalorder %s47_s25, %s47_s25 }
  0x2d   :  { %p2179_p5 = scmp.ne.s32.totalorder %s47_s25, %s2178_s9  ;;  %p2184_p7 = scmp.lt.s32.totalorder %s2178_s9, %s2178_s9 }
  0x2f   :  { %p2185_p8 = por %p2184_p7, %p2183_p6 }
  0x31   :  { %p2186_p9 = pnand %p2185_p8, %p2179_p5 }
  0x33   :  { %2189 = shalt.err (!%p2186_p9)
}
  0x34   :  { %s2249_s0 = smov 256   ;;  %s2250_s10 = smov 16  }
  0x35   :  { %52 = dma.hbm_to_vmem [thread:$0]  %s2891_s3, 4096, %s47_s25, [#allocation7], %s2249_s0, %s2249_s0, %s2250_s10  }
  0x36   :  { %s2251_s13 = smov [#allocation9]   ;;  %s2190_s17 = scalar_lea.hbm %s2892_s4, 2048 }
  0x37   :  { %s58_s14 = sshll.u32 %s2251_s13, 4  ;;  %p2191_p10 = scmp.ne.s32.totalorder %s2892_s4, %s2190_s17  ;;  %s59_s14 = int_to_ptr.vmem [resolvable:$true] %s58_s14 }
  0x38   :  { %p2194_p11 = scmp.lt.u32.totalorder %s2190_s17, %s2892_s4 }
  0x3a   :  { %p2196_p12 = pnand %p2194_p11, %p2191_p10 }
  0x3c   :  { %2199 = shalt.err (!%p2196_p12)
}
  0x3d   :  { %s2200_s23 = scalar_lea.vmem %s59_s14, 2048  ;;  %p2205_p0 = scmp.lt.s32.totalorder %s59_s14, %s59_s14 }
  0x3e   :  { %p2201_p13 = scmp.ne.s32.totalorder %s59_s14, %s2200_s23  ;;  %p2206_p1 = scmp.lt.s32.totalorder %s2200_s23, %s2200_s23 }
  0x40   :  { %p2207_p2 = por %p2206_p1, %p2205_p0 }
  0x42   :  { %p2208_p3 = pnand %p2207_p2, %p2201_p13 }
  0x44   :  { %2211 = shalt.err (!%p2208_p3)
}
  0x45   :  { %64 = dma.hbm_to_vmem [thread:$0]  %s2892_s4, 2048, %s59_s14, [#allocation10], %s2246_s1, %s2246_s1, %s2247_s21  }
  0x46   :  { %2234 = dma.done.wait [#allocation4], 1024  }
  0x47   :  { %2235 = vsyncadd [#allocation4], 4294966272 }
  0x48   :  { %2236 = dma.done.wait [#allocation7], 12288  }
  0x49   :  { %2237 = vsyncadd [#allocation7], 4294955008 }
  0x4a   :  { %2238 = dma.done.wait [#allocation10], 2048  }
  0x4b   :  { %2239 = vsyncadd [#allocation10], 4294965248  ;;  %v2896_v0 = vmov 0.0   ;;  %v89_v1 = vld [vmem:[#allocation6 + $0x8] sm:$0xff]  ;;  %v91_v3 = vld [vmem:[#allocation6 + $0x18] sm:$0xff]  ;;  %vm2255_vm0 = vmmov 0  }
  0x4c   :  { %238 = vmatprep.mubr.f32.mxu0 %v2896_v0  ;;  %351 = vmatprep.mubr.f32.mxu1 %v2896_v0  ;;  %v93_v2 = vld [vmem:[#allocation6 + $0x28] sm:$0xff]  ;;  %v95_v5 = vld [vmem:[#allocation6 + $0x38] sm:$0xff]  ;;  %v88_v6 = vld [vmem:[#allocation6] sm:$0xff]  ;;  %s2256_s25 = smov [#allocation11]  }
  0x4d   :  { %v1809_v4 = vpack.c.bf16 %v93_v2, %v89_v1  ;;  %v92_v7 = vld [vmem:[#allocation6 + $0x20] sm:$0xff]  ;;  %v1841_v8 = vpack.c.bf16 %v95_v5, %v91_v3  ;;  %v90_v10 = vld [vmem:[#allocation6 + $0x10] sm:$0xff]  ;;  %v97_v12 = vld [vmem:[#allocation6 + $0x48] sm:$0xff]  ;;  %s1682_s26 = sshll.u32 %s2256_s25, 4  ;;  %s1683_s26 = int_to_ptr.vmem [resolvable:$true] %s1682_s26 }
  0x4e   :  { %v1811_v9 = vpack.c.bf16 %v92_v7, %v88_v6  ;;  %v94_v11 = vld [vmem:[#allocation6 + $0x30] sm:$0xff]  ;;  %v101_v14 = vld [vmem:[#allocation6 + $0x68] sm:$0xff]  ;;  %v99_v15 = vld [vmem:[#allocation6 + $0x58] sm:$0xff]  ;;  %p2217_p5 = scmp.lt.s32.totalorder %s1683_s26, %s1683_s26 }
  0x4f   :  { %1810 = vmatprep.subr.bf16.mxu0 %v1809_v4  ;;  %v1843_v13 = vpack.c.bf16 %v94_v11, %v90_v10  ;;  %v103_v16 = vld [vmem:[#allocation6 + $0x78] sm:$0xff]  ;;  %1842 = vmatprep.subr.bf16.mxu1 %v1841_v8  ;;  %v1813_v17 = vpack.c.bf16 %v101_v14, %v97_v12  ;;  %v96_v19 = vld [vmem:[#allocation6 + $0x40] sm:$0xff]  ;;  %v98_v21 = vld [vmem:[#allocation6 + $0x50] sm:$0xff] }
  0x50   :  { %1812 = vmatpush1.bf16.msra.mxu0 %v1811_v9  ;;  %v1845_v18 = vpack.c.bf16 %v103_v16, %v99_v15  ;;  %v100_v20 = vld [vmem:[#allocation6 + $0x60] sm:$0xff]  ;;  %v102_v23 = vld [vmem:[#allocation6 + $0x70] sm:$0xff]  ;;  %v105_v24 = vld [vmem:[#allocation6 + $0x88] sm:$0xff] }
  0x51   :  { %1844 = vmatpush1.bf16.msra.mxu1 %v1843_v13  ;;  %v1815_v22 = vpack.c.bf16 %v100_v20, %v96_v19  ;;  %v109_v25 = vld [vmem:[#allocation6 + $0xa8] sm:$0xff]  ;;  %1814 = vmatprep.subr.bf16.mxu0 %v1813_v17  ;;  %v1847_v26 = vpack.c.bf16 %v102_v23, %v98_v21  ;;  %v107_v28 = vld [vmem:[#allocation6 + $0x98] sm:$0xff]  ;;  %v104_v30 = vld [vmem:[#allocation6 + $0x80] sm:$0xff] }
  0x52   :  { %1846 = vmatprep.subr.bf16.mxu1 %v1845_v18  ;;  %v1817_v27 = vpack.c.bf16 %v109_v25, %v105_v24  ;;  %v111_v29 = vld [vmem:[#allocation6 + $0xb8] sm:$0xff]  ;;  %v108_v32 = vld [vmem:[#allocation6 + $0xa0] sm:$0xff]  ;;  %v106_v33 = vld [vmem:[#allocation6 + $0x90] sm:$0xff] }
  0x53   :  { %v1849_v31 = vpack.c.bf16 %v111_v29, %v107_v28  ;;  %v110_v34 = vld [vmem:[#allocation6 + $0xb0] sm:$0xff]  ;;  %v1819_v35 = vpack.c.bf16 %v108_v32, %v104_v30  ;;  %v113_v36 = vld [vmem:[#allocation6 + $0xc8] sm:$0xff]  ;;  %v115_v38 = vld [vmem:[#allocation6 + $0xd8] sm:$0xff] }
  0x54   :  { %1816 = vmatpush1.bf16.msra.mxu0 %v1815_v22  ;;  %v117_v37 = vld [vmem:[#allocation6 + $0xe8] sm:$0xff]  ;;  %v1851_v39 = vpack.c.bf16 %v110_v34, %v106_v33  ;;  %v119_v41 = vld [vmem:[#allocation6 + $0xf8] sm:$0xff]  ;;  %v112_v42 = vld [vmem:[#allocation6 + $0xc0] sm:$0xff] }
  0x55   :  { %1848 = vmatpush1.bf16.msra.mxu1 %v1847_v26  ;;  %1818 = vmatprep.subr.bf16.mxu0 %v1817_v27  ;;  %v1821_v40 = vpack.c.bf16 %v117_v37, %v113_v36  ;;  %v116_v43 = vld [vmem:[#allocation6 + $0xe0] sm:$0xff]  ;;  %v1853_v44 = vpack.c.bf16 %v119_v41, %v115_v38  ;;  %v114_v45 = vld [vmem:[#allocation6 + $0xd0] sm:$0xff]  ;;  %v121_v47 = vld [vmem:[#allocation6 + $0x108] sm:$0xff] }
  0x56   :  { %1850 = vmatprep.subr.bf16.mxu1 %v1849_v31  ;;  %v118_v46 = vld [vmem:[#allocation6 + $0xf0] sm:$0xff]  ;;  %v125_v48 = vld [vmem:[#allocation6 + $0x128] sm:$0xff]  ;;  %v123_v49 = vld [vmem:[#allocation6 + $0x118] sm:$0xff]  ;;  %v1823_v51 = vpack.c.bf16 %v116_v43, %v112_v42 }
  0x57   :  { %v127_v50 = vld [vmem:[#allocation6 + $0x138] sm:$0xff]  ;;  %v1855_v52 = vpack.c.bf16 %v118_v46, %v114_v45  ;;  %v1825_v53 = vpack.c.bf16 %v125_v48, %v121_v47  ;;  %v120_v54 = vld [vmem:[#allocation6 + $0x100] sm:$0xff]  ;;  %v122_v56 = vld [vmem:[#allocation6 + $0x110] sm:$0xff] }
  0x58   :  { %1820 = vmatpush1.bf16.msra.mxu0 %v1819_v35  ;;  %v124_v55 = vld [vmem:[#allocation6 + $0x120] sm:$0xff]  ;;  %v1857_v57 = vpack.c.bf16 %v127_v50, %v123_v49  ;;  %v126_v58 = vld [vmem:[#allocation6 + $0x130] sm:$0xff]  ;;  %v129_v59 = vld [vmem:[#allocation6 + $0x148] sm:$0xff] }
  0x59   :  { %1852 = vmatpush1.bf16.msra.mxu1 %v1851_v39  ;;  %1822 = vmatprep.subr.bf16.mxu0 %v1821_v40  ;;  %v133_v60 = vld [vmem:[#allocation6 + $0x168] sm:$0xff]  ;;  %v131_v61 = vld [vmem:[#allocation6 + $0x158] sm:$0xff]  ;;  %v1827_v63 = vpack.c.bf16 %v124_v55, %v120_v54  ;;  %v1859_v1 = vpack.c.bf16 %v126_v58, %v122_v56  ;;  %v128_v3 = vld [vmem:[#allocation6 + $0x140] sm:$0xff] }
  0x5a   :  { %1854 = vmatprep.subr.bf16.mxu1 %v1853_v44  ;;  %v135_v62 = vld [vmem:[#allocation6 + $0x178] sm:$0xff]  ;;  %v1829_v2 = vpack.c.bf16 %v133_v60, %v129_v59  ;;  %v132_v4 = vld [vmem:[#allocation6 + $0x160] sm:$0xff]  ;;  %v130_v5 = vld [vmem:[#allocation6 + $0x150] sm:$0xff] }
  0x5b   :  { %v1861_v6 = vpack.c.bf16 %v135_v62, %v131_v61  ;;  %v134_v7 = vld [vmem:[#allocation6 + $0x170] sm:$0xff]  ;;  %v137_v8 = vld [vmem:[#allocation6 + $0x188] sm:$0xff]  ;;  %v139_v10 = vld [vmem:[#allocation6 + $0x198] sm:$0xff]  ;;  %v1831_v12 = vpack.c.bf16 %v132_v4, %v128_v3 }
  0x5c   :  { %1824 = vmatpush1.bf16.msra.mxu0 %v1823_v51  ;;  %v141_v9 = vld [vmem:[#allocation6 + $0x1a8] sm:$0xff]  ;;  %v143_v11 = vld [vmem:[#allocation6 + $0x1b8] sm:$0xff]  ;;  %v136_v13 = vld [vmem:[#allocation6 + $0x180] sm:$0xff]  ;;  %v1863_v16 = vpack.c.bf16 %v134_v7, %v130_v5 }
  0x5d   :  { %1856 = vmatpush1.bf16.msra.mxu1 %v1855_v52  ;;  %1826 = vmatprep.subr.bf16.mxu0 %v1825_v53  ;;  %v140_v14 = vld [vmem:[#allocation6 + $0x1a0] sm:$0xff]  ;;  %v138_v15 = vld [vmem:[#allocation6 + $0x190] sm:$0xff]  ;;  %v1833_v17 = vpack.c.bf16 %v141_v9, %v137_v8  ;;  %v145_v19 = vld [vmem:[#allocation6 + $0x1c8] sm:$0xff]  ;;  %v1865_v20 = vpack.c.bf16 %v143_v11, %v139_v10  ;;  %v2897_v11 = vmov 0  }
  0x5e   :  { %1858 = vmatprep.subr.bf16.mxu1 %v1857_v57  ;;  %v142_v18 = vld [vmem:[#allocation6 + $0x1b0] sm:$0xff]  ;;  %v149_v21 = vld [vmem:[#allocation6 + $0x1e8] sm:$0xff]  ;;  %v147_v22 = vld [vmem:[#allocation6 + $0x1d8] sm:$0xff]  ;;  %v1835_v24 = vpack.c.bf16 %v140_v14, %v136_v13 }
  0x5f   :  { %v151_v23 = vld [vmem:[#allocation6 + $0x1f8] sm:$0xff]  ;;  %v144_v25 = vld [vmem:[#allocation6 + $0x1c0] sm:$0xff]  ;;  %v1867_v26 = vpack.c.bf16 %v142_v18, %v138_v15  ;;  %v1837_v27 = vpack.c.bf16 %v149_v21, %v145_v19  ;;  %v146_v30 = vld [vmem:[#allocation6 + $0x1d0] sm:$0xff] }
  0x60   :  { %1828 = vmatpush1.bf16.msra.mxu0 %v1827_v63  ;;  %v148_v28 = vld [vmem:[#allocation6 + $0x1e0] sm:$0xff]  ;;  %v1869_v29 = vpack.c.bf16 %v151_v23, %v147_v22  ;;  %v150_v31 = vld [vmem:[#allocation6 + $0x1f0] sm:$0xff]  ;;  %v2350_v35 = vld [vmem:[#allocation8 + $0xc] ss:$16 sps:$4 sm:$0xff]  }
  0x61   :  { %1860 = vmatpush1.bf16.msra.mxu1 %v1859_v1  ;;  %1830 = vmatprep.subr.bf16.mxu0 %v1829_v2  ;;  %v1839_v32 = vpack.c.bf16 %v148_v28, %v144_v25  ;;  %v1871_v33 = vpack.c.bf16 %v150_v31, %v146_v30  ;;  %v2348_v34 = vld [vmem:[#allocation8 + $0x4] ss:$16 sps:$4 sm:$0xff]   ;;  %v2352_v37 = vld [vmem:[#allocation8] ss:$16 sps:$4 sm:$0xff]   ;;  %v2355_v38 = vld [vmem:[#allocation8 + $0x8] ss:$16 sps:$4 sm:$0xff]  }
  0x62   :  { %1862 = vmatprep.subr.bf16.mxu1 %v1861_v6  ;;  %v80_v36 = vld [vmem:[#allocation3] sm:$0xff]  ;;  %v2360_v40 = vld [vmem:[#allocation8 + $0x2c] ss:$16 sps:$4 sm:$0xff]   ;;  %v2367_v43 = vld [vmem:[#allocation8 + $0x28] ss:$16 sps:$4 sm:$0xff]  }
  0x63   :  { %v2358_v39 = vld [vmem:[#allocation8 + $0x24] ss:$16 sps:$4 sm:$0xff]   ;;  %v81_v41 = vld [vmem:[#allocation3 + $0x8] sm:$0xff]  ;;  %v2363_v42 = vld [vmem:[#allocation8 + $0x20] ss:$16 sps:$4 sm:$0xff]  }
  0x64   :  { %1832 = vmatpush1.bf16.msra.mxu0 %v1831_v12  ;;  %v2371_v44 = vld [vmem:[#allocation8 + $0x44] ss:$16 sps:$4 sm:$0xff]   ;;  %v2374_v46 = vld [vmem:[#allocation8 + $0x4c] ss:$16 sps:$4 sm:$0xff]   ;;  %v2377_v47 = vld [vmem:[#allocation8 + $0x40] ss:$16 sps:$4 sm:$0xff]   ;;  %v2895_v12 = vlaneseq }
  0x65   :  { %1864 = vmatpush1.bf16.msra.mxu1 %v1863_v16  ;;  %1834 = vmatprep.subr.bf16.mxu0 %v1833_v17  ;;  %v82_v45 = vld [vmem:[#allocation3 + $0x10] sm:$0xff]  ;;  %v2381_v48 = vld [vmem:[#allocation8 + $0x48] ss:$16 sps:$4 sm:$0xff]   ;;  %v2388_v50 = vld [vmem:[#allocation8 + $0x6c] ss:$16 sps:$4 sm:$0xff]  }
  0x66   :  { %1866 = vmatprep.subr.bf16.mxu1 %v1865_v20  ;;  %v2385_v49 = vld [vmem:[#allocation8 + $0x64] ss:$16 sps:$4 sm:$0xff]   ;;  %v83_v51 = vld [vmem:[#allocation3 + $0x18] sm:$0xff]  ;;  %v2391_v52 = vld [vmem:[#allocation8 + $0x60] ss:$16 sps:$4 sm:$0xff]   ;;  %v155_v13 = vshrl.u32 %v2895_v12, 7 }
  0x67   :  { %v2395_v53 = vld [vmem:[#allocation8 + $0x68] ss:$16 sps:$4 sm:$0xff]   ;;  %v2399_v54 = vld [vmem:[#allocation8 + $0x84] ss:$16 sps:$4 sm:$0xff]   ;;  %v2402_v55 = vld [vmem:[#allocation8 + $0x8c] ss:$16 sps:$4 sm:$0xff]  }
  0x68   :  { %1836 = vmatpush1.bf16.msra.mxu0 %v1835_v24  ;;  %v84_v56 = vld [vmem:[#allocation3 + $0x20] sm:$0xff]  ;;  %v2409_v58 = vld [vmem:[#allocation8 + $0x88] ss:$16 sps:$4 sm:$0xff]   ;;  %v2416_v60 = vld [vmem:[#allocation8 + $0xac] ss:$16 sps:$4 sm:$0xff]   ;;  %v156_v14 = vsub.s32 0, %v155_v13 }
  0x69   :  { %1868 = vmatpush1.bf16.msra.mxu1 %v1867_v26  ;;  %1838 = vmatprep.subr.bf16.mxu0 %v1837_v27  ;;  %v2405_v57 = vld [vmem:[#allocation8 + $0x80] ss:$16 sps:$4 sm:$0xff]   ;;  %v2413_v59 = vld [vmem:[#allocation8 + $0xa4] ss:$16 sps:$4 sm:$0xff]   ;;  %v85_v61 = vld [vmem:[#allocation3 + $0x28] sm:$0xff]  ;;  %v160_v17 = vsub.s32 1, %v155_v13 }
  0x6a   :  { %1870 = vmatprep.subr.bf16.mxu1 %v1869_v29  ;;  %v2419_v62 = vld [vmem:[#allocation8 + $0xa0] ss:$16 sps:$4 sm:$0xff]   ;;  %v2423_v63 = vld [vmem:[#allocation8 + $0xa8] ss:$16 sps:$4 sm:$0xff]   ;;  %v2427_v1 = vld [vmem:[#allocation8 + $0xc4] ss:$16 sps:$4 sm:$0xff]  }
  0x6b   :  { %v2430_v2 = vld [vmem:[#allocation8 + $0xcc] ss:$16 sps:$4 sm:$0xff]   ;;  %v86_v3 = vld [vmem:[#allocation3 + $0x30] sm:$0xff]  ;;  %v2437_v5 = vld [vmem:[#allocation8 + $0xc8] ss:$16 sps:$4 sm:$0xff]   ;;  %v164_v18 = vsub.s32 2, %v155_v13 }
  0x6c   :  { %1840 = vmatpush1.bf16.msra.mxu0 %v1839_v32  ;;  %v2433_v4 = vld [vmem:[#allocation8 + $0xc0] ss:$16 sps:$4 sm:$0xff]   ;;  %v2441_v6 = vld [vmem:[#allocation8 + $0xe4] ss:$16 sps:$4 sm:$0xff]   ;;  %v2444_v7 = vld [vmem:[#allocation8 + $0xec] ss:$16 sps:$4 sm:$0xff]  }
  0x6d   :  { %1872 = vmatpush1.bf16.msra.mxu1 %v1871_v33  ;;  %631 = vmatprep.subr.bf16.mxu0 %v2348_v34  ;;  %v87_v8 = vld [vmem:[#allocation3 + $0x38] sm:$0xff]  ;;  %v2447_v9 = vld [vmem:[#allocation8 + $0xe0] ss:$16 sps:$4 sm:$0xff]   ;;  %v168_v21 = vsub.s32 3, %v155_v13 }
  0x6e   :  { %672 = vmatprep.subr.bf16.mxu1 %v2350_v35  ;;  %v2451_v10 = vld [vmem:[#allocation8 + $0xe8] ss:$16 sps:$4 sm:$0xff]   ;;  %v152_v15 = vld [vmem:[%s2890_s2] sm:$0xf] }
  0x6f   :  { %239 = vmatmul.mubr.f32.vlgmr.msra.gmra.mrb[0].mxu0 %v80_v36  ;;  %v157_v23 = vrot.slane %v152_v15, %v156_v14  ;;  %v161_v24 = vrot.slane %v152_v15, %v160_v17  ;;  %v165_v26 = vrot.slane %v152_v15, %v164_v18  ;;  %v169_v29 = vrot.slane %v152_v15, %v168_v21 }
  0x70   :  { %352 = vmatmul.mubr.f32.vlgmr.msra.gmra.mrb[0].mxu1 %v80_v36  ;;  %632 = vmatpush1.bf16.msra.mxu0 %v2352_v37 }
  0x71   :  { %673 = vmatpush1.bf16.msra.mxu1 %v2355_v38  ;;  %244 = vmatprep.mubr.f32.mxu0 %v2896_v0 }
  0x72   :  { %357 = vmatprep.mubr.f32.mxu1 %v2896_v0  ;;  %633 = vmatprep.subr.bf16.mxu0 %v2358_v39 }
  0x73   :  { %245 = vmatmul.mubr.f32.gmra.mrb[2].mxu0 %v81_v41  ;;  %674 = vmatprep.subr.bf16.mxu1 %v2360_v40 }
  0x74   :  { %358 = vmatmul.mubr.f32.gmra.mrb[2].mxu1 %v81_v41  ;;  %634 = vmatpush1.bf16.msra.mxu0 %v2363_v42 }
  0x75   :  { %675 = vmatpush1.bf16.msra.mxu1 %v2367_v43  ;;  %250 = vmatprep.mubr.f32.mxu0 %v2896_v0 }
  0x76   :  { %363 = vmatprep.mubr.f32.mxu1 %v2896_v0  ;;  %635 = vmatprep.subr.bf16.mxu0 %v2371_v44 }
  0x77   :  { %251 = vmatmul.mubr.f32.gmra.mrb[4].mxu0 %v82_v45  ;;  %676 = vmatprep.subr.bf16.mxu1 %v2374_v46 }
  0x78   :  { %364 = vmatmul.mubr.f32.gmra.mrb[4].mxu1 %v82_v45  ;;  %636 = vmatpush1.bf16.msra.mxu0 %v2377_v47 }
  0x79   :  { %677 = vmatpush1.bf16.msra.mxu1 %v2381_v48  ;;  %256 = vmatprep.mubr.f32.mxu0 %v2896_v0 }
  0x7a   :  { %369 = vmatprep.mubr.f32.mxu1 %v2896_v0  ;;  %637 = vmatprep.subr.bf16.mxu0 %v2385_v49 }
  0x7b   :  { %257 = vmatmul.mubr.f32.gmra.mrb[6].mxu0 %v83_v51  ;;  %678 = vmatprep.subr.bf16.mxu1 %v2388_v50 }
  0x7c   :  { %370 = vmatmul.mubr.f32.gmra.mrb[6].mxu1 %v83_v51  ;;  %638 = vmatpush1.bf16.msra.mxu0 %v2391_v52 }
  0x7d   :  { %679 = vmatpush1.bf16.msra.mxu1 %v2395_v53  ;;  %262 = vmatprep.mubr.f32.mxu0 %v2896_v0 }
  0x7e   :  { %375 = vmatprep.mubr.f32.mxu1 %v2896_v0  ;;  %639 = vmatprep.subr.bf16.mxu0 %v2399_v54 }
  0x7f   :  { %263 = vmatmul.mubr.f32.gmra.mrb[8].mxu0 %v84_v56  ;;  %680 = vmatprep.subr.bf16.mxu1 %v2402_v55 }
  0x80   :  { %376 = vmatmul.mubr.f32.gmra.mrb[8].mxu1 %v84_v56  ;;  %640 = vmatpush1.bf16.msra.mxu0 %v2405_v57 }
  0x81   :  { %681 = vmatpush1.bf16.msra.mxu1 %v2409_v58  ;;  %268 = vmatprep.mubr.f32.mxu0 %v2896_v0 }
  0x82   :  { %381 = vmatprep.mubr.f32.mxu1 %v2896_v0  ;;  %641 = vmatprep.subr.bf16.mxu0 %v2413_v59 }
  0x83   :  { %269 = vmatmul.mubr.f32.gmra.mrb[10].mxu0 %v85_v61  ;;  %682 = vmatprep.subr.bf16.mxu1 %v2416_v60 }
  0x84   :  { %382 = vmatmul.mubr.f32.gmra.mrb[10].mxu1 %v85_v61  ;;  %642 = vmatpush1.bf16.msra.mxu0 %v2419_v62 }
  0x85   :  { %683 = vmatpush1.bf16.msra.mxu1 %v2423_v63  ;;  %274 = vmatprep.mubr.f32.mxu0 %v2896_v0 }
  0x86   :  { %387 = vmatprep.mubr.f32.mxu1 %v2896_v0  ;;  %643 = vmatprep.subr.bf16.mxu0 %v2427_v1 }
  0x87   :  { %275 = vmatmul.mubr.f32.gmra.mrb[12].mxu0 %v86_v3  ;;  %684 = vmatprep.subr.bf16.mxu1 %v2430_v2 }
  0x88   :  { %388 = vmatmul.mubr.f32.gmra.mrb[12].mxu1 %v86_v3  ;;  %644 = vmatpush1.bf16.msra.mxu0 %v2433_v4 }
  0x89   :  { %685 = vmatpush1.bf16.msra.mxu1 %v2437_v5  ;;  %280 = vmatprep.mubr.f32.mxu0 %v2896_v0 }
  0x8a   :  { %393 = vmatprep.mubr.f32.mxu1 %v2896_v0  ;;  %645 = vmatprep.subr.bf16.mxu0 %v2441_v6 }
  0x8b   :  { %281 = vmatmul.mubr.f32.gmra.mrb[14].mxu0 %v87_v8  ;;  %686 = vmatprep.subr.bf16.mxu1 %v2444_v7 }
  0x8c   :  { %394 = vmatmul.mubr.f32.gmra.mrb[14].mxu1 %v87_v8  ;;  %646 = vmatpush1.bf16.msra.mxu0 %v2447_v9 }
  0x8d   :  { %687 = vmatpush1.bf16.msra.mxu1 %v2451_v10  ;;  %663 = vmatprep.mubr.bf16.mxu0 %v2897_v11 }
  0x8e   :  { %704 = vmatprep.mubr.bf16.mxu1 %v2897_v11  ;;  %749 = vmatprep.subr.bf16.mxu0 %v2348_v34 }
  0x8f   :  { %664 = vmatmul.mubr.bf16.vlgmr.msra.gmra.mrb[16].mxu0 %v2897_v11  ;;  %790 = vmatprep.subr.bf16.mxu1 %v2350_v35 }
  0x90   :  { %705 = vmatmul.mubr.bf16.vlgmr.msra.gmra.mrb[16].mxu1 %v2897_v11  ;;  %750 = vmatpush1.bf16.msra.mxu0 %v2352_v37 }
  0x91   :  { %791 = vmatpush1.bf16.msra.mxu1 %v2355_v38  ;;  %751 = vmatprep.subr.bf16.mxu0 %v2358_v39 }
  0x92   :  { %792 = vmatprep.subr.bf16.mxu1 %v2360_v40  ;;  %781 = vmatprep.mubr.bf16.mxu0 %v2897_v11 }
  0x93   :  { %822 = vmatprep.mubr.bf16.mxu1 %v2897_v11 }
  0x94   :  { %752 = vmatpush1.bf16.msra.mxu0 %v2363_v42 }
  0x95   :  { %793 = vmatpush1.bf16.msra.mxu1 %v2367_v43  ;;  %753 = vmatprep.subr.bf16.mxu0 %v2371_v44 }
  0x96   :  { %794 = vmatprep.subr.bf16.mxu1 %v2374_v46 }
  0x98   :  { %754 = vmatpush1.bf16.msra.mxu0 %v2377_v47 }
  0x99   :  { %795 = vmatpush1.bf16.msra.mxu1 %v2381_v48  ;;  %755 = vmatprep.subr.bf16.mxu0 %v2385_v49 }
  0x9a   :  { %796 = vmatprep.subr.bf16.mxu1 %v2388_v50 }
  0x9c   :  { %756 = vmatpush1.bf16.msra.mxu0 %v2391_v52 }
  0x9d   :  { %797 = vmatpush1.bf16.msra.mxu1 %v2395_v53  ;;  %757 = vmatprep.subr.bf16.mxu0 %v2399_v54 }
  0x9e   :  { %798 = vmatprep.subr.bf16.mxu1 %v2402_v55 }
  0xa0   :  { %758 = vmatpush1.bf16.msra.mxu0 %v2405_v57 }
  0xa1   :  { %799 = vmatpush1.bf16.msra.mxu1 %v2409_v58  ;;  %759 = vmatprep.subr.bf16.mxu0 %v2413_v59 }
  0xa2   :  { %800 = vmatprep.subr.bf16.mxu1 %v2416_v60 }
  0xa4   :  { %760 = vmatpush1.bf16.msra.mxu0 %v2419_v62 }
  0xa5   :  { %801 = vmatpush1.bf16.msra.mxu1 %v2423_v63  ;;  %761 = vmatprep.subr.bf16.mxu0 %v2427_v1 }
  0xa6   :  { %802 = vmatprep.subr.bf16.mxu1 %v2430_v2 }
  0xa8   :  { %762 = vmatpush1.bf16.msra.mxu0 %v2433_v4 }
  0xa9   :  { %803 = vmatpush1.bf16.msra.mxu1 %v2437_v5  ;;  %763 = vmatprep.subr.bf16.mxu0 %v2441_v6 }
  0xaa   :  { %804 = vmatprep.subr.bf16.mxu1 %v2444_v7 }
  0xac   :  { %764 = vmatpush1.bf16.msra.mxu0 %v2447_v9 }
  0xad   :  { %805 = vmatpush1.bf16.msra.mxu1 %v2451_v10  ;;  %867 = vmatprep.subr.bf16.mxu0 %v2348_v34 }
  0xae   :  { %908 = vmatprep.subr.bf16.mxu1 %v2350_v35 }
 0x142   :  { %v2502_v16 = vpop.f32.mrb[0].mxu0 }
 0x143   :  { %v2504_v19 = vpop.f32.mrb[1].mxu0  ;;  %v2506_v20 = vpop.f32.mrb[0].mxu1 }
 0x144   :  { %v2508_v22 = vpop.f32.mrb[1].mxu1 }
 0x146   :  { %v246_v25 = vpop.f32.mrb[2].mxu0 }
 0x147   :  { %v2510_v27 = vadd.f32 %v246_v25, %v157_v23  ;;  %v248_v28 = vpop.f32.mrb[3].mxu0  ;;  %v359_v30 = vpop.f32.mrb[2].mxu1 }
 0x148   :  { %v2512_v31 = vadd.f32 %v248_v28, %v161_v24  ;;  %v2514_v32 = vadd.f32 %v359_v30, %v165_v26  ;;  %v361_v33 = vpop.f32.mrb[3].mxu1 }
 0x149   :  { %v2516_v36 = vadd.f32 %v361_v33, %v169_v29 }
 0x14a   :  { %v252_v41 = vpop.f32.mrb[4].mxu0 }
 0x14b   :  { %v2518_v45 = vadd.f32 %v252_v41, %v157_v23  ;;  %v254_v51 = vpop.f32.mrb[5].mxu0  ;;  %v365_v56 = vpop.f32.mrb[4].mxu1 }
 0x14c   :  { %v2520_v61 = vadd.f32 %v254_v51, %v161_v24  ;;  %v2522_v3 = vadd.f32 %v365_v56, %v165_v26  ;;  %v367_v8 = vpop.f32.mrb[5].mxu1 }
 0x14d   :  { %v2524_v13 = vadd.f32 %v367_v8, %v169_v29 }
 0x14e   :  { %v258_v14 = vpop.f32.mrb[6].mxu0 }
 0x14f   :  { %2899 = vst [vmem:[#allocation16_spill] sm:$0xff] %v2524_v13  ;;  %v2526_v15 = vadd.f32 %v258_v14, %v157_v23  ;;  %v260_v17 = vpop.f32.mrb[7].mxu0  ;;  %v371_v18 = vpop.f32.mrb[6].mxu1 }
 0x150   :  { %v2528_v21 = vadd.f32 %v260_v17, %v161_v24  ;;  %v2530_v25 = vadd.f32 %v371_v18, %v165_v26  ;;  %v373_v28 = vpop.f32.mrb[7].mxu1 }
 0x151   :  { %2900 = vst [vmem:[#allocation17_spill] sm:$0xff] %v2526_v15  ;;  %v2532_v30 = vadd.f32 %v373_v28, %v169_v29 }
 0x152   :  { %2901 = vst [vmem:[#allocation18_spill] sm:$0xff] %v2528_v21  ;;  %2902 = vst [vmem:[#allocation19_spill] sm:$0xff] %v2530_v25  ;;  %v264_v33 = vpop.f32.mrb[8].mxu0 }
 0x153   :  { %2903 = vst [vmem:[#allocation20_spill] sm:$0xff] %v2532_v30  ;;  %v2534_v41 = vadd.f32 %v264_v33, %v157_v23  ;;  %v266_v51 = vpop.f32.mrb[9].mxu0  ;;  %v377_v56 = vpop.f32.mrb[8].mxu1 }
 0x154   :  { %v2536_v12 = vadd.f32 %v266_v51, %v161_v24  ;;  %v2538_v8 = vadd.f32 %v377_v56, %v165_v26  ;;  %v379_v14 = vpop.f32.mrb[9].mxu1 }
 0x155   :  { %2904 = vst [vmem:[#allocation21_spill] sm:$0xff] %v2534_v41  ;;  %v2540_v0 = vadd.f32 %v379_v14, %v169_v29 }
 0x156   :  { %2905 = vst [vmem:[#allocation22_spill] sm:$0xff] %v2536_v12  ;;  %2906 = vst [vmem:[#allocation23_spill] sm:$0xff] %v2538_v8  ;;  %v270_v11 = vpop.f32.mrb[10].mxu0 }
 0x157   :  { %2907 = vst [vmem:[#allocation24_spill] sm:$0xff] %v2540_v0  ;;  %v2542_v17 = vadd.f32 %v270_v11, %v157_v23  ;;  %v272_v18 = vpop.f32.mrb[11].mxu0  ;;  %v383_v21 = vpop.f32.mrb[10].mxu1 }
 0x158   :  { %v2544_v25 = vadd.f32 %v272_v18, %v161_v24  ;;  %v2546_v28 = vadd.f32 %v383_v21, %v165_v26  ;;  %v385_v33 = vpop.f32.mrb[11].mxu1 }
 0x159   :  { %2908 = vst [vmem:[#allocation25_spill] sm:$0xff] %v2542_v17  ;;  %v2548_v41 = vadd.f32 %v385_v33, %v169_v29 }
 0x15a   :  { %2909 = vst [vmem:[#allocation26_spill] sm:$0xff] %v2544_v25  ;;  %2910 = vst [vmem:[#allocation27_spill] sm:$0xff] %v2546_v28  ;;  %v276_v30 = vpop.f32.mrb[12].mxu0 }
 0x15b   :  { %2911 = vst [vmem:[#allocation28_spill] sm:$0xff] %v2548_v41  ;;  %v2550_v51 = vadd.f32 %v276_v30, %v157_v23  ;;  %v278_v56 = vpop.f32.mrb[13].mxu0  ;;  %v389_v12 = vpop.f32.mrb[12].mxu1 }
 0x15c   :  { %v2552_v8 = vadd.f32 %v278_v56, %v161_v24  ;;  %v2554_v14 = vadd.f32 %v389_v12, %v165_v26  ;;  %v391_v11 = vpop.f32.mrb[13].mxu1  ;;  %v243_v12 = vadd.f32 %v2504_v19, %v161_v24  ;;  %v354_v56 = vadd.f32 %v2506_v20, %v165_v26 }
 0x15d   :  { %2912 = vst [vmem:[#allocation29_spill] sm:$0xff] %v2550_v51  ;;  %v2556_v17 = vadd.f32 %v391_v11, %v169_v29  ;;  %v241_v51 = vadd.f32 %v2502_v16, %v157_v23 }
 0x15e   :  { %2913 = vst [vmem:[#allocation30_spill] sm:$0xff] %v2552_v8  ;;  %2914 = vst [vmem:[#allocation31_spill] sm:$0xff] %v2554_v14  ;;  %v282_v0 = vpop.f32.mrb[14].mxu0 }
 0x15f   :  { %2915 = vst [vmem:[#allocation32_spill] sm:$0xff] %v2556_v17  ;;  %v2558_v18 = vadd.f32 %v282_v0, %v157_v23  ;;  %v284_v21 = vpop.f32.mrb[15].mxu0  ;;  %v395_v25 = vpop.f32.mrb[14].mxu1  ;;  %v356_v17 = vadd.f32 %v2508_v22, %v169_v29 }
 0x160   :  { %v2560_v28 = vadd.f32 %v284_v21, %v161_v24  ;;  %v2562_v33 = vadd.f32 %v395_v25, %v165_v26  ;;  %v397_v30 = vpop.f32.mrb[15].mxu1 }
 0x161   :  { %2916 = vst [vmem:[#allocation33_spill] sm:$0xff] %v2558_v18  ;;  %v2565_v41 = vadd.f32 %v397_v30, %v169_v29 }
 0x162   :  { %2917 = vst [vmem:[#allocation34_spill] sm:$0xff] %v2560_v28  ;;  %2918 = vst [vmem:[#allocation35_spill] sm:$0xff] %v2562_v33  ;;  %v665_v11 = vpop.f32.mrb[16].mxu0 }
 0x163   :  { %v713_v0 = vadd.f32 %v665_v11, %v241_v51  ;;  %v706_v18 = vpop.f32.mrb[16].mxu1  ;;  %v667_v8 = vpop.f32.mrb[17].mxu0 }
 0x164   :  { %v715_v14 = vadd.f32 %v706_v18, %v354_v56  ;;  %v714_v21 = vadd.f32 %v667_v8, %v243_v12  ;;  %v708_v28 = vpop.f32.mrb[17].mxu1  ;;  %v669_v25 = vpop.f32.mrb[18].mxu0 }
 0x165   :  { %v1732_v33 = vmul.f32 -1.442695, %v713_v0  ;;  %v716_v15 = vadd.f32 %v708_v28, %v356_v17  ;;  %v670_v13 = vpop.f32.mrb[19].mxu0  ;;  %v710_v16 = vpop.f32.mrb[18].mxu1 }
 0x166   :  { %v1733_v23 = vmul.f32 -1.442695, %v714_v21  ;;  %v711_v30 = vpop.f32.mrb[19].mxu1 }
 0x167   :  { %1960 = vpow2.f32 %v1732_v33  ;;  %v1734_v19 = vmul.f32 -1.442695, %v716_v15 }
 0x168   :  { %1962 = vpow2.f32 %v1733_v23 }
 0x169   :  { %1964 = vpow2.f32 %v1734_v19 }
 0x16a   :  { %1966 = vtanh.f32 %v715_v14  ;;  %v2919_v14 = vmov 0  }
 0x171   :  { %v1961_v20 = vpop.eup %1960 }
 0x172   :  { %v1963_v24 = vpop.eup %1962  ;;  %v720_v26 = vadd.f32 1.0, %v1961_v20 }
 0x173   :  { %v726_v22 = vadd.f32 1.0, %v1963_v24  ;;  %v1965_v29 = vpop.eup %1964 }
 0x174   :  { %1968 = vrcp.f32 %v720_v26  ;;  %v1967_v8 = vpop.eup %1966  ;;  %v733_v13 = vadd.f32 1.0, %v1965_v29 }
 0x175   :  { %1970 = vrcp.f32 %v726_v22 }
 0x176   :  { %1972 = vrcp.f32 %v733_v13 }
 0x17e   :  { %v1969_v51 = vpop.eup %1968 }
 0x17f   :  { %v1971_v18 = vpop.eup %1970  ;;  %v737_v17 = vmul.f32 %v1969_v51, %v1967_v8 }
 0x180   :  { %v736_v28 = vmul.f32 0.0, %v1971_v18  ;;  %v1973_v15 = vpop.eup %1972 }
 0x182   :  { %v2570_v12 = vadd.f32 %v737_v17, %v736_v28 }
 0x184   :  { %1974 = vtanh.f32 %v2570_v12 }
 0x18e   :  { %v1975_v33 = vpop.eup %1974 }
 0x18f   :  { %v740_v56 = vmul.f32 %v1975_v33, %v1973_v15 }
 0x191   :  { %v748_v11 = vpack.c.bf16 %v740_v56, %v740_v56 }
 0x193   :  { %782 = vmatmul.mubr.bf16.vlgmr.msra.gmra.mrb[20].mxu0 %v748_v11  ;;  %823 = vmatmul.mubr.bf16.vlgmr.msra.gmra.mrb[20].mxu1 %v748_v11 }
 0x194   :  { %868 = vmatpush1.bf16.msra.mxu0 %v2352_v37  ;;  %909 = vmatpush1.bf16.msra.mxu1 %v2355_v38 }
 0x195   :  { %869 = vmatprep.subr.bf16.mxu0 %v2358_v39  ;;  %910 = vmatprep.subr.bf16.mxu1 %v2360_v40 }
 0x196   :  { %899 = vmatprep.mubr.bf16.mxu0 %v2919_v14  ;;  %940 = vmatprep.mubr.bf16.mxu1 %v2919_v14 }
 0x198   :  { %870 = vmatpush1.bf16.msra.mxu0 %v2363_v42  ;;  %911 = vmatpush1.bf16.msra.mxu1 %v2367_v43 }
 0x199   :  { %871 = vmatprep.subr.bf16.mxu0 %v2371_v44  ;;  %912 = vmatprep.subr.bf16.mxu1 %v2374_v46 }
 0x19c   :  { %872 = vmatpush1.bf16.msra.mxu0 %v2377_v47  ;;  %913 = vmatpush1.bf16.msra.mxu1 %v2381_v48 }
 0x19d   :  { %873 = vmatprep.subr.bf16.mxu0 %v2385_v49  ;;  %914 = vmatprep.subr.bf16.mxu1 %v2388_v50 }
 0x1a0   :  { %874 = vmatpush1.bf16.msra.mxu0 %v2391_v52  ;;  %915 = vmatpush1.bf16.msra.mxu1 %v2395_v53 }
 0x1a1   :  { %875 = vmatprep.subr.bf16.mxu0 %v2399_v54  ;;  %916 = vmatprep.subr.bf16.mxu1 %v2402_v55 }
 0x1a4   :  { %876 = vmatpush1.bf16.msra.mxu0 %v2405_v57  ;;  %917 = vmatpush1.bf16.msra.mxu1 %v2409_v58 }
 0x1a5   :  { %877 = vmatprep.subr.bf16.mxu0 %v2413_v59  ;;  %918 = vmatprep.subr.bf16.mxu1 %v2416_v60 }
 0x1a8   :  { %878 = vmatpush1.bf16.msra.mxu0 %v2419_v62  ;;  %919 = vmatpush1.bf16.msra.mxu1 %v2423_v63 }
 0x1a9   :  { %879 = vmatprep.subr.bf16.mxu0 %v2427_v1  ;;  %920 = vmatprep.subr.bf16.mxu1 %v2430_v2 }
 0x1ac   :  { %880 = vmatpush1.bf16.msra.mxu0 %v2433_v4  ;;  %921 = vmatpush1.bf16.msra.mxu1 %v2437_v5 }
 0x1ad   :  { %881 = vmatprep.subr.bf16.mxu0 %v2441_v6  ;;  %922 = vmatprep.subr.bf16.mxu1 %v2444_v7 }
 0x1b0   :  { %882 = vmatpush1.bf16.msra.mxu0 %v2447_v9  ;;  %923 = vmatpush1.bf16.msra.mxu1 %v2451_v10 }
 0x1b1   :  { %985 = vmatprep.subr.bf16.mxu0 %v2348_v34  ;;  %1026 = vmatprep.subr.bf16.mxu1 %v2350_v35 }
 0x266   :  { %v783_v0 = vpop.f32.mrb[20].mxu0  ;;  %v824_v21 = vpop.f32.mrb[20].mxu1 }
 0x267   :  { %v831_v25 = vadd.f32 %v783_v0, %v2510_v27  ;;  %v833_v16 = vadd.f32 %v824_v21, %v2514_v32  ;;  %v785_v23 = vpop.f32.mrb[21].mxu0  ;;  %v826_v30 = vpop.f32.mrb[21].mxu1 }
 0x268   :  { %v832_v19 = vadd.f32 %v785_v23, %v2512_v31  ;;  %v834_v20 = vadd.f32 %v826_v30, %v2516_v36  ;;  %v787_v24 = vpop.f32.mrb[22].mxu0  ;;  %v828_v26 = vpop.f32.mrb[22].mxu1 }
 0x269   :  { %v1735_v22 = vmul.f32 -1.442695, %v831_v25  ;;  %v788_v29 = vpop.f32.mrb[23].mxu0  ;;  %v829_v8 = vpop.f32.mrb[23].mxu1 }
 0x26a   :  { %v1736_v51 = vmul.f32 -1.442695, %v832_v19  ;;  %v1737_v18 = vmul.f32 -1.442695, %v834_v20  ;;  %v2920_v29 = vld [vmem:[#allocation16_spill] sm:$0xff] }
 0x26b   :  { %1976 = vpow2.f32 %v1735_v22 }
 0x26c   :  { %1978 = vpow2.f32 %v1736_v51 }
 0x26d   :  { %1980 = vpow2.f32 %v1737_v18 }
 0x26e   :  { %1982 = vtanh.f32 %v833_v16 }
 0x275   :  { %v1977_v17 = vpop.eup %1976 }
 0x276   :  { %v1979_v13 = vpop.eup %1978  ;;  %v838_v27 = vadd.f32 1.0, %v1977_v17 }
 0x277   :  { %v844_v32 = vadd.f32 1.0, %v1979_v13  ;;  %v1981_v31 = vpop.eup %1980 }
 0x278   :  { %1984 = vrcp.f32 %v838_v27  ;;  %v1983_v28 = vpop.eup %1982  ;;  %v851_v56 = vadd.f32 1.0, %v1981_v31 }
 0x279   :  { %1986 = vrcp.f32 %v844_v32 }
 0x27a   :  { %1988 = vrcp.f32 %v851_v56 }
 0x282   :  { %v1985_v36 = vpop.eup %1984 }
 0x283   :  { %v1987_v15 = vpop.eup %1986  ;;  %v855_v33 = vmul.f32 %v1985_v36, %v1983_v28 }
 0x284   :  { %v854_v11 = vmul.f32 %v1987_v15, %v2570_v12  ;;  %v1989_v21 = vpop.eup %1988 }
 0x286   :  { %v2612_v0 = vadd.f32 %v855_v33, %v854_v11 }
 0x288   :  { %1990 = vtanh.f32 %v2612_v0 }
 0x292   :  { %v1991_v25 = vpop.eup %1990 }
 0x293   :  { %v858_v23 = vmul.f32 %v1991_v25, %v1989_v21 }
 0x295   :  { %v866_v16 = vpack.c.bf16 %v858_v23, %v858_v23 }
 0x297   :  { %900 = vmatmul.mubr.bf16.vlgmr.msra.gmra.mrb[24].mxu0 %v866_v16  ;;  %941 = vmatmul.mubr.bf16.vlgmr.msra.gmra.mrb[24].mxu1 %v866_v16 }
 0x298   :  { %986 = vmatpush1.bf16.msra.mxu0 %v2352_v37  ;;  %1027 = vmatpush1.bf16.msra.mxu1 %v2355_v38 }
 0x299   :  { %987 = vmatprep.subr.bf16.mxu0 %v2358_v39  ;;  %1028 = vmatprep.subr.bf16.mxu1 %v2360_v40 }
 0x29a   :  { %1017 = vmatprep.mubr.bf16.mxu0 %v2919_v14  ;;  %1058 = vmatprep.mubr.bf16.mxu1 %v2919_v14 }
 0x29c   :  { %988 = vmatpush1.bf16.msra.mxu0 %v2363_v42  ;;  %1029 = vmatpush1.bf16.msra.mxu1 %v2367_v43 }
 0x29d   :  { %989 = vmatprep.subr.bf16.mxu0 %v2371_v44  ;;  %1030 = vmatprep.subr.bf16.mxu1 %v2374_v46 }
 0x2a0   :  { %990 = vmatpush1.bf16.msra.mxu0 %v2377_v47  ;;  %1031 = vmatpush1.bf16.msra.mxu1 %v2381_v48 }
 0x2a1   :  { %991 = vmatprep.subr.bf16.mxu0 %v2385_v49  ;;  %1032 = vmatprep.subr.bf16.mxu1 %v2388_v50 }
 0x2a4   :  { %992 = vmatpush1.bf16.msra.mxu0 %v2391_v52  ;;  %1033 = vmatpush1.bf16.msra.mxu1 %v2395_v53 }
 0x2a5   :  { %993 = vmatprep.subr.bf16.mxu0 %v2399_v54  ;;  %1034 = vmatprep.subr.bf16.mxu1 %v2402_v55 }
 0x2a8   :  { %994 = vmatpush1.bf16.msra.mxu0 %v2405_v57  ;;  %1035 = vmatpush1.bf16.msra.mxu1 %v2409_v58 }
 0x2a9   :  { %995 = vmatprep.subr.bf16.mxu0 %v2413_v59  ;;  %1036 = vmatprep.subr.bf16.mxu1 %v2416_v60 }
 0x2ac   :  { %996 = vmatpush1.bf16.msra.mxu0 %v2419_v62  ;;  %1037 = vmatpush1.bf16.msra.mxu1 %v2423_v63 }
 0x2ad   :  { %997 = vmatprep.subr.bf16.mxu0 %v2427_v1  ;;  %1038 = vmatprep.subr.bf16.mxu1 %v2430_v2 }
 0x2b0   :  { %998 = vmatpush1.bf16.msra.mxu0 %v2433_v4  ;;  %1039 = vmatpush1.bf16.msra.mxu1 %v2437_v5 }
 0x2b1   :  { %999 = vmatprep.subr.bf16.mxu0 %v2441_v6  ;;  %1040 = vmatprep.subr.bf16.mxu1 %v2444_v7 }
 0x2b4   :  { %1000 = vmatpush1.bf16.msra.mxu0 %v2447_v9  ;;  %1041 = vmatpush1.bf16.msra.mxu1 %v2451_v10 }
 0x2b5   :  { %1103 = vmatprep.subr.bf16.mxu0 %v2348_v34  ;;  %1144 = vmatprep.subr.bf16.mxu1 %v2350_v35 }
 0x36a   :  { %v901_v12 = vpop.f32.mrb[24].mxu0  ;;  %v942_v30 = vpop.f32.mrb[24].mxu1 }
 0x36b   :  { %v949_v19 = vadd.f32 %v901_v12, %v2518_v45  ;;  %v951_v20 = vadd.f32 %v942_v30, %v2522_v3  ;;  %v903_v24 = vpop.f32.mrb[25].mxu0  ;;  %v944_v26 = vpop.f32.mrb[25].mxu1 }
 0x36c   :  { %v950_v22 = vadd.f32 %v903_v24, %v2520_v61  ;;  %v952_v8 = vadd.f32 %v944_v26, %v2920_v29  ;;  %v905_v51 = vpop.f32.mrb[26].mxu0  ;;  %v946_v18 = vpop.f32.mrb[26].mxu1  ;;  %v2921_v24 = vld [vmem:[#allocation17_spill] sm:$0xff] }
 0x36d   :  { %v1738_v17 = vmul.f32 -1.442695, %v949_v19  ;;  %v906_v13 = vpop.f32.mrb[27].mxu0  ;;  %v947_v27 = vpop.f32.mrb[27].mxu1  ;;  %v2923_v18 = vld [vmem:[#allocation18_spill] sm:$0xff] }
 0x36e   :  { %v1739_v32 = vmul.f32 -1.442695, %v950_v22  ;;  %v1740_v31 = vmul.f32 -1.442695, %v952_v8  ;;  %v2922_v22 = vld [vmem:[#allocation19_spill] sm:$0xff]  ;;  %v2924_v13 = vld [vmem:[#allocation20_spill] sm:$0xff] }
 0x36f   :  { %1992 = vpow2.f32 %v1738_v17 }
 0x370   :  { %1994 = vpow2.f32 %v1739_v32 }
 0x371   :  { %1996 = vpow2.f32 %v1740_v31 }
 0x372   :  { %1998 = vtanh.f32 %v951_v20 }
 0x379   :  { %v1993_v28 = vpop.eup %1992 }
 0x37a   :  { %v1995_v36 = vpop.eup %1994  ;;  %v956_v45 = vadd.f32 1.0, %v1993_v28 }
 0x37b   :  { %v962_v3 = vadd.f32 1.0, %v1995_v36  ;;  %v1997_v61 = vpop.eup %1996 }
 0x37c   :  { %2000 = vrcp.f32 %v956_v45  ;;  %v1999_v15 = vpop.eup %1998  ;;  %v969_v21 = vadd.f32 1.0, %v1997_v61 }
 0x37d   :  { %2002 = vrcp.f32 %v962_v3 }
 0x37e   :  { %2004 = vrcp.f32 %v969_v21 }
 0x386   :  { %v2001_v33 = vpop.eup %2000 }
 0x387   :  { %v2003_v56 = vpop.eup %2002  ;;  %v973_v11 = vmul.f32 %v2001_v33, %v1999_v15 }
 0x388   :  { %v972_v25 = vmul.f32 %v2003_v56, %v2612_v0  ;;  %v2005_v16 = vpop.eup %2004 }
 0x38a   :  { %v2654_v23 = vadd.f32 %v973_v11, %v972_v25 }
 0x38c   :  { %2006 = vtanh.f32 %v2654_v23 }
 0x396   :  { %v2007_v12 = vpop.eup %2006 }
 0x397   :  { %v976_v30 = vmul.f32 %v2007_v12, %v2005_v16 }
 0x399   :  { %v984_v19 = vpack.c.bf16 %v976_v30, %v976_v30 }
 0x39b   :  { %1018 = vmatmul.mubr.bf16.vlgmr.msra.gmra.mrb[28].mxu0 %v984_v19  ;;  %1059 = vmatmul.mubr.bf16.vlgmr.msra.gmra.mrb[28].mxu1 %v984_v19 }
 0x39c   :  { %1104 = vmatpush1.bf16.msra.mxu0 %v2352_v37  ;;  %1145 = vmatpush1.bf16.msra.mxu1 %v2355_v38 }
 0x39d   :  { %1105 = vmatprep.subr.bf16.mxu0 %v2358_v39  ;;  %1146 = vmatprep.subr.bf16.mxu1 %v2360_v40 }
 0x39e   :  { %1135 = vmatprep.mubr.bf16.mxu0 %v2919_v14  ;;  %1176 = vmatprep.mubr.bf16.mxu1 %v2919_v14 }
 0x3a0   :  { %1106 = vmatpush1.bf16.msra.mxu0 %v2363_v42  ;;  %1147 = vmatpush1.bf16.msra.mxu1 %v2367_v43 }
 0x3a1   :  { %1107 = vmatprep.subr.bf16.mxu0 %v2371_v44  ;;  %1148 = vmatprep.subr.bf16.mxu1 %v2374_v46 }
 0x3a4   :  { %1108 = vmatpush1.bf16.msra.mxu0 %v2377_v47  ;;  %1149 = vmatpush1.bf16.msra.mxu1 %v2381_v48 }
 0x3a5   :  { %1109 = vmatprep.subr.bf16.mxu0 %v2385_v49  ;;  %1150 = vmatprep.subr.bf16.mxu1 %v2388_v50 }
 0x3a8   :  { %1110 = vmatpush1.bf16.msra.mxu0 %v2391_v52  ;;  %1151 = vmatpush1.bf16.msra.mxu1 %v2395_v53 }
 0x3a9   :  { %1111 = vmatprep.subr.bf16.mxu0 %v2399_v54  ;;  %1152 = vmatprep.subr.bf16.mxu1 %v2402_v55 }
 0x3ac   :  { %1112 = vmatpush1.bf16.msra.mxu0 %v2405_v57  ;;  %1153 = vmatpush1.bf16.msra.mxu1 %v2409_v58 }
 0x3ad   :  { %1113 = vmatprep.subr.bf16.mxu0 %v2413_v59  ;;  %1154 = vmatprep.subr.bf16.mxu1 %v2416_v60 }
 0x3b0   :  { %1114 = vmatpush1.bf16.msra.mxu0 %v2419_v62  ;;  %1155 = vmatpush1.bf16.msra.mxu1 %v2423_v63 }
 0x3b1   :  { %1115 = vmatprep.subr.bf16.mxu0 %v2427_v1  ;;  %1156 = vmatprep.subr.bf16.mxu1 %v2430_v2 }
 0x3b4   :  { %1116 = vmatpush1.bf16.msra.mxu0 %v2433_v4  ;;  %1157 = vmatpush1.bf16.msra.mxu1 %v2437_v5 }
 0x3b5   :  { %1117 = vmatprep.subr.bf16.mxu0 %v2441_v6  ;;  %1158 = vmatprep.subr.bf16.mxu1 %v2444_v7 }
 0x3b8   :  { %1118 = vmatpush1.bf16.msra.mxu0 %v2447_v9  ;;  %1159 = vmatpush1.bf16.msra.mxu1 %v2451_v10 }
 0x3b9   :  { %1221 = vmatprep.subr.bf16.mxu0 %v2348_v34  ;;  %1262 = vmatprep.subr.bf16.mxu1 %v2350_v35 }
 0x46e   :  { %v1019_v0 = vpop.f32.mrb[28].mxu0  ;;  %v1060_v20 = vpop.f32.mrb[28].mxu1 }
 0x46f   :  { %v1067_v26 = vadd.f32 %v1019_v0, %v2921_v24  ;;  %v1069_v29 = vadd.f32 %v1060_v20, %v2922_v22  ;;  %v1021_v8 = vpop.f32.mrb[29].mxu0  ;;  %v1062_v51 = vpop.f32.mrb[29].mxu1 }
 0x470   :  { %v1068_v17 = vadd.f32 %v1021_v8, %v2923_v18  ;;  %v1070_v27 = vadd.f32 %v1062_v51, %v2924_v13  ;;  %v1023_v32 = vpop.f32.mrb[30].mxu0  ;;  %v1064_v31 = vpop.f32.mrb[30].mxu1 }
 0x471   :  { %v1741_v28 = vmul.f32 -1.442695, %v1067_v26  ;;  %v1024_v36 = vpop.f32.mrb[31].mxu0  ;;  %v1065_v45 = vpop.f32.mrb[31].mxu1 }
 0x472   :  { %v1742_v34 = vmul.f32 -1.442695, %v1068_v17  ;;  %v1743_v35 = vmul.f32 -1.442695, %v1070_v27 }
 0x473   :  { %2008 = vpow2.f32 %v1741_v28 }
 0x474   :  { %2010 = vpow2.f32 %v1742_v34  ;;  %v2745_v34 = vld [vmem:[#allocation8] ss:$16 sps:$4 sm:$0xff]  }
 0x475   :  { %2012 = vpow2.f32 %v1743_v35  ;;  %v2748_v35 = vld [vmem:[#allocation8 + $0x8] ss:$16 sps:$4 sm:$0xff]  }
 0x476   :  { %2014 = vtanh.f32 %v1069_v29 }
 0x47d   :  { %v2009_v3 = vpop.eup %2008 }
 0x47e   :  { %v2011_v61 = vpop.eup %2010  ;;  %v1074_v15 = vadd.f32 1.0, %v2009_v3  ;;  %v2751_v3 = vld [vmem:[#allocation8 + $0x24] ss:$16 sps:$4 sm:$0xff]  }
 0x47f   :  { %v1080_v33 = vadd.f32 1.0, %v2011_v61  ;;  %v2013_v56 = vpop.eup %2012  ;;  %v2754_v61 = vld [vmem:[#allocation8 + $0x2c] ss:$16 sps:$4 sm:$0xff]  }
 0x480   :  { %2016 = vrcp.f32 %v1074_v15  ;;  %v2015_v11 = vpop.eup %2014  ;;  %v1087_v12 = vadd.f32 1.0, %v2013_v56  ;;  %v2759_v15 = vld [vmem:[#allocation8 + $0x20] ss:$16 sps:$4 sm:$0xff]   ;;  %v2765_v56 = vld [vmem:[#allocation8 + $0x44] ss:$16 sps:$4 sm:$0xff]  }
 0x481   :  { %2018 = vrcp.f32 %v1080_v33  ;;  %v2762_v33 = vld [vmem:[#allocation8 + $0x28] ss:$16 sps:$4 sm:$0xff]  }
 0x482   :  { %2020 = vrcp.f32 %v1087_v12  ;;  %v2780_v12 = vld [vmem:[#allocation8 + $0x6c] ss:$16 sps:$4 sm:$0xff]  }
 0x48a   :  { %v2017_v21 = vpop.eup %2016 }
 0x48b   :  { %v2019_v25 = vpop.eup %2018  ;;  %v1091_v16 = vmul.f32 %v2017_v21, %v2015_v11  ;;  %v2768_v11 = vld [vmem:[#allocation8 + $0x4c] ss:$16 sps:$4 sm:$0xff]   ;;  %v2771_v21 = vld [vmem:[#allocation8 + $0x40] ss:$16 sps:$4 sm:$0xff]  }
 0x48c   :  { %v1090_v30 = vmul.f32 %v2019_v25, %v2654_v23  ;;  %v2021_v0 = vpop.eup %2020  ;;  %v2774_v25 = vld [vmem:[#allocation8 + $0x48] ss:$16 sps:$4 sm:$0xff]  }
 0x48e   :  { %v2696_v19 = vadd.f32 %v1091_v16, %v1090_v30  ;;  %v2777_v16 = vld [vmem:[#allocation8 + $0x64] ss:$16 sps:$4 sm:$0xff]   ;;  %v2783_v30 = vld [vmem:[#allocation8 + $0x60] ss:$16 sps:$4 sm:$0xff]  }
 0x490   :  { %2022 = vtanh.f32 %v2696_v19 }
 0x49a   :  { %v2023_v20 = vpop.eup %2022 }
 0x49b   :  { %v1094_v24 = vmul.f32 %v2023_v20, %v2021_v0  ;;  %v2789_v0 = vld [vmem:[#allocation8 + $0x84] ss:$16 sps:$4 sm:$0xff]   ;;  %v2792_v20 = vld [vmem:[#allocation8 + $0x8c] ss:$16 sps:$4 sm:$0xff]  }
 0x49d   :  { %v1102_v26 = vpack.c.bf16 %v1094_v24, %v1094_v24  ;;  %v2795_v24 = vld [vmem:[#allocation8 + $0x80] ss:$16 sps:$4 sm:$0xff]  }
 0x49f   :  { %1136 = vmatmul.mubr.bf16.vlgmr.msra.gmra.mrb[32].mxu0 %v1102_v26  ;;  %1177 = vmatmul.mubr.bf16.vlgmr.msra.gmra.mrb[32].mxu1 %v1102_v26  ;;  %v2798_v26 = vld [vmem:[#allocation8 + $0x88] ss:$16 sps:$4 sm:$0xff]  }
 0x4a0   :  { %1222 = vmatpush1.bf16.msra.mxu0 %v2352_v37  ;;  %1263 = vmatpush1.bf16.msra.mxu1 %v2355_v38  ;;  %v2731_v37 = vld [vmem:[#allocation8 + $0x4] ss:$16 sps:$4 sm:$0xff]   ;;  %v2734_v38 = vld [vmem:[#allocation8 + $0xc] ss:$16 sps:$4 sm:$0xff]  }
 0x4a1   :  { %1223 = vmatprep.subr.bf16.mxu0 %v2358_v39  ;;  %1264 = vmatprep.subr.bf16.mxu1 %v2360_v40 }
 0x4a2   :  { %1253 = vmatprep.mubr.bf16.mxu0 %v2919_v14  ;;  %1294 = vmatprep.mubr.bf16.mxu1 %v2919_v14 }
 0x4a4   :  { %1224 = vmatpush1.bf16.msra.mxu0 %v2363_v42  ;;  %1265 = vmatpush1.bf16.msra.mxu1 %v2367_v43  ;;  %v2925_v42 = vld [vmem:[#allocation21_spill] sm:$0xff] }
 0x4a5   :  { %1225 = vmatprep.subr.bf16.mxu0 %v2371_v44  ;;  %1266 = vmatprep.subr.bf16.mxu1 %v2374_v46  ;;  %v2926_v44 = vld [vmem:[#allocation23_spill] sm:$0xff] }
 0x4a8   :  { %1226 = vmatpush1.bf16.msra.mxu0 %v2377_v47  ;;  %1267 = vmatpush1.bf16.msra.mxu1 %v2381_v48 }
 0x4a9   :  { %1227 = vmatprep.subr.bf16.mxu0 %v2385_v49  ;;  %1268 = vmatprep.subr.bf16.mxu1 %v2388_v50  ;;  %v2927_v49 = vld [vmem:[#allocation22_spill] sm:$0xff] }
 0x4ac   :  { %1228 = vmatpush1.bf16.msra.mxu0 %v2391_v52  ;;  %1269 = vmatpush1.bf16.msra.mxu1 %v2395_v53  ;;  %v2928_v52 = vld [vmem:[#allocation24_spill] sm:$0xff] }
 0x4ad   :  { %1229 = vmatprep.subr.bf16.mxu0 %v2399_v54  ;;  %1270 = vmatprep.subr.bf16.mxu1 %v2402_v55 }
 0x4b0   :  { %1230 = vmatpush1.bf16.msra.mxu0 %v2405_v57  ;;  %1271 = vmatpush1.bf16.msra.mxu1 %v2409_v58 }
 0x4b1   :  { %1231 = vmatprep.subr.bf16.mxu0 %v2413_v59  ;;  %1272 = vmatprep.subr.bf16.mxu1 %v2416_v60 }
 0x4b4   :  { %1232 = vmatpush1.bf16.msra.mxu0 %v2419_v62  ;;  %1273 = vmatpush1.bf16.msra.mxu1 %v2423_v63 }
 0x4b5   :  { %1233 = vmatprep.subr.bf16.mxu0 %v2427_v1  ;;  %1274 = vmatprep.subr.bf16.mxu1 %v2430_v2 }
 0x4b8   :  { %1234 = vmatpush1.bf16.msra.mxu0 %v2433_v4  ;;  %1275 = vmatpush1.bf16.msra.mxu1 %v2437_v5 }
 0x4b9   :  { %1235 = vmatprep.subr.bf16.mxu0 %v2441_v6  ;;  %1276 = vmatprep.subr.bf16.mxu1 %v2444_v7 }
 0x4bc   :  { %1236 = vmatpush1.bf16.msra.mxu0 %v2447_v9  ;;  %1277 = vmatpush1.bf16.msra.mxu1 %v2451_v10 }
 0x4bd   :  { %1339 = vmatprep.subr.bf16.mxu0 %v2731_v37  ;;  %1380 = vmatprep.subr.bf16.mxu1 %v2734_v38 }
 0x572   :  { %v1137_v39 = vpop.f32.mrb[32].mxu0  ;;  %v1178_v40 = vpop.f32.mrb[32].mxu1 }
 0x573   :  { %v1185_v43 = vadd.f32 %v1137_v39, %v2925_v42  ;;  %v1187_v46 = vadd.f32 %v1178_v40, %v2926_v44  ;;  %v1139_v47 = vpop.f32.mrb[33].mxu0  ;;  %v1180_v48 = vpop.f32.mrb[33].mxu1  ;;  %v2801_v39 = vld [vmem:[#allocation8 + $0xa4] ss:$16 sps:$4 sm:$0xff]   ;;  %v2804_v40 = vld [vmem:[#allocation8 + $0xac] ss:$16 sps:$4 sm:$0xff]  }
 0x574   :  { %v1186_v50 = vadd.f32 %v1139_v47, %v2927_v49  ;;  %v1188_v53 = vadd.f32 %v1180_v48, %v2928_v52  ;;  %v1141_v54 = vpop.f32.mrb[34].mxu0  ;;  %v1182_v55 = vpop.f32.mrb[34].mxu1  ;;  %v2807_v42 = vld [vmem:[#allocation8 + $0xa0] ss:$16 sps:$4 sm:$0xff]   ;;  %v2813_v44 = vld [vmem:[#allocation8 + $0xc4] ss:$16 sps:$4 sm:$0xff]  }
 0x575   :  { %v1744_v57 = vmul.f32 -1.442695, %v1185_v43  ;;  %v1142_v58 = vpop.f32.mrb[35].mxu0  ;;  %v1183_v59 = vpop.f32.mrb[35].mxu1  ;;  %v2810_v43 = vld [vmem:[#allocation8 + $0xa8] ss:$16 sps:$4 sm:$0xff]  }
 0x576   :  { %v1745_v60 = vmul.f32 -1.442695, %v1186_v50  ;;  %v1746_v62 = vmul.f32 -1.442695, %v1188_v53  ;;  %v2929_v48 = vld [vmem:[#allocation25_spill] sm:$0xff]  ;;  %v2930_v49 = vld [vmem:[#allocation27_spill] sm:$0xff] }
 0x577   :  { %2024 = vpow2.f32 %v1744_v57  ;;  %v2931_v52 = vld [vmem:[#allocation26_spill] sm:$0xff]  ;;  %v2932_v53 = vld [vmem:[#allocation28_spill] sm:$0xff] }
 0x578   :  { %2026 = vpow2.f32 %v1745_v60 }
 0x579   :  { %2028 = vpow2.f32 %v1746_v62 }
 0x57a   :  { %2030 = vtanh.f32 %v1187_v46 }
 0x581   :  { %v2025_v63 = vpop.eup %2024 }
 0x582   :  { %v2027_v1 = vpop.eup %2026  ;;  %v1192_v23 = vadd.f32 1.0, %v2025_v63 }
 0x583   :  { %v1198_v22 = vadd.f32 1.0, %v2027_v1  ;;  %v2029_v29 = vpop.eup %2028 }
 0x584   :  { %2032 = vrcp.f32 %v1192_v23  ;;  %v2031_v8 = vpop.eup %2030  ;;  %v1205_v13 = vadd.f32 1.0, %v2029_v29 }
 0x585   :  { %2034 = vrcp.f32 %v1198_v22 }
 0x586   :  { %2036 = vrcp.f32 %v1205_v13 }
 0x58e   :  { %v2033_v51 = vpop.eup %2032 }
 0x58f   :  { %v2035_v18 = vpop.eup %2034  ;;  %v1209_v17 = vmul.f32 %v2033_v51, %v2031_v8 }
 0x590   :  { %v1208_v27 = vmul.f32 %v2035_v18, %v2696_v19  ;;  %v2037_v31 = vpop.eup %2036  ;;  %v2786_v19 = vld [vmem:[#allocation8 + $0x68] ss:$16 sps:$4 sm:$0xff]  }
 0x592   :  { %v2742_v32 = vadd.f32 %v1209_v17, %v1208_v27 }
 0x594   :  { %2038 = vtanh.f32 %v2742_v32 }
 0x59e   :  { %v2039_v28 = vpop.eup %2038 }
 0x59f   :  { %v1212_v36 = vmul.f32 %v2039_v28, %v2037_v31  ;;  %v2119_v28 = vld [vmem:[#allocation8 + $0xc8] ss:$16 sps:$4 sm:$0xff]  }
 0x5a1   :  { %v1220_v45 = vpack.c.bf16 %v1212_v36, %v1212_v36  ;;  %v2120_v36 = vld [vmem:[#allocation8 + $0xe4] ss:$16 sps:$4 sm:$0xff]  }
 0x5a3   :  { %1254 = vmatmul.mubr.bf16.vlgmr.msra.gmra.mrb[36].mxu0 %v1220_v45  ;;  %1295 = vmatmul.mubr.bf16.vlgmr.msra.gmra.mrb[36].mxu1 %v1220_v45  ;;  %v2121_v45 = vld [vmem:[#allocation8 + $0xec] ss:$16 sps:$4 sm:$0xff]  }
 0x5a4   :  { %1340 = vmatpush1.bf16.msra.mxu0 %v2745_v34  ;;  %1381 = vmatpush1.bf16.msra.mxu1 %v2748_v35 }
 0x5a5   :  { %1341 = vmatprep.subr.bf16.mxu0 %v2751_v3  ;;  %1382 = vmatprep.subr.bf16.mxu1 %v2754_v61 }
 0x5a6   :  { %1371 = vmatprep.mubr.bf16.mxu0 %v2919_v14  ;;  %1412 = vmatprep.mubr.bf16.mxu1 %v2919_v14 }
 0x5a8   :  { %1342 = vmatpush1.bf16.msra.mxu0 %v2759_v15  ;;  %1383 = vmatpush1.bf16.msra.mxu1 %v2762_v33 }
 0x5a9   :  { %1343 = vmatprep.subr.bf16.mxu0 %v2765_v56  ;;  %1384 = vmatprep.subr.bf16.mxu1 %v2768_v11 }
 0x5ac   :  { %1344 = vmatpush1.bf16.msra.mxu0 %v2771_v21  ;;  %1385 = vmatpush1.bf16.msra.mxu1 %v2774_v25 }
 0x5ad   :  { %1345 = vmatprep.subr.bf16.mxu0 %v2777_v16  ;;  %1386 = vmatprep.subr.bf16.mxu1 %v2780_v12 }
 0x5b0   :  { %1346 = vmatpush1.bf16.msra.mxu0 %v2783_v30  ;;  %1387 = vmatpush1.bf16.msra.mxu1 %v2786_v19 }
 0x5b1   :  { %1347 = vmatprep.subr.bf16.mxu0 %v2789_v0  ;;  %1388 = vmatprep.subr.bf16.mxu1 %v2792_v20 }
 0x5b4   :  { %1348 = vmatpush1.bf16.msra.mxu0 %v2795_v24  ;;  %1389 = vmatpush1.bf16.msra.mxu1 %v2798_v26 }
 0x5b5   :  { %1349 = vmatprep.subr.bf16.mxu0 %v2801_v39  ;;  %1390 = vmatprep.subr.bf16.mxu1 %v2804_v40 }
 0x5b8   :  { %1350 = vmatpush1.bf16.msra.mxu0 %v2807_v42  ;;  %1391 = vmatpush1.bf16.msra.mxu1 %v2810_v43 }
 0x5b9   :  { %1351 = vmatprep.subr.bf16.mxu0 %v2813_v44  ;;  %1392 = vmatprep.subr.bf16.mxu1 %v2430_v2 }
 0x5bc   :  { %1352 = vmatpush1.bf16.msra.mxu0 %v2433_v4  ;;  %1393 = vmatpush1.bf16.msra.mxu1 %v2437_v5 }
 0x5bd   :  { %1353 = vmatprep.subr.bf16.mxu0 %v2441_v6  ;;  %1394 = vmatprep.subr.bf16.mxu1 %v2444_v7 }
 0x5c0   :  { %1354 = vmatpush1.bf16.msra.mxu0 %v2447_v9  ;;  %1395 = vmatpush1.bf16.msra.mxu1 %v2451_v10 }
 0x5c1   :  { %1457 = vmatprep.subr.bf16.mxu0 %v2731_v37  ;;  %1498 = vmatprep.subr.bf16.mxu1 %v2734_v38 }
 0x676   :  { %v1255_v46 = vpop.f32.mrb[36].mxu0  ;;  %v1296_v47 = vpop.f32.mrb[36].mxu1 }
 0x677   :  { %v1303_v2 = vadd.f32 %v1255_v46, %v2929_v48  ;;  %v1305_v4 = vadd.f32 %v1296_v47, %v2930_v49  ;;  %v1257_v50 = vpop.f32.mrb[37].mxu0  ;;  %v1298_v5 = vpop.f32.mrb[37].mxu1 }
 0x678   :  { %v1304_v6 = vadd.f32 %v1257_v50, %v2931_v52  ;;  %v1306_v7 = vadd.f32 %v1298_v5, %v2932_v53  ;;  %v1259_v54 = vpop.f32.mrb[38].mxu0  ;;  %v1300_v9 = vpop.f32.mrb[38].mxu1 }
 0x679   :  { %v1747_v55 = vmul.f32 -1.442695, %v1303_v2  ;;  %v1260_v10 = vpop.f32.mrb[39].mxu0  ;;  %v1301_v57 = vpop.f32.mrb[39].mxu1 }
 0x67a   :  { %v1748_v37 = vmul.f32 -1.442695, %v1304_v6  ;;  %v1749_v38 = vmul.f32 -1.442695, %v1306_v7  ;;  %v1568_v10 = vld [vmem:[#allocation9 + $0x8] sm:$0xff] }
 0x67b   :  { %2040 = vpow2.f32 %v1747_v55  ;;  %v1567_v55 = vld [vmem:[#allocation9] sm:$0xff] }
 0x67c   :  { %2042 = vpow2.f32 %v1748_v37  ;;  %v1874_v57 = vpack.c.bf16 %v1568_v10, %v1567_v55  ;;  %v2254_v37 = vmov 0.0|0.0  }
 0x67d   :  { %2044 = vpow2.f32 %v1749_v38  ;;  %v1569_v38 = vld [vmem:[#allocation9 + $0x10] sm:$0xff] }
 0x67e   :  { %2046 = vtanh.f32 %v1305_v4 }
 0x685   :  { %v2041_v58 = vpop.eup %2040 }
 0x686   :  { %v2043_v59 = vpop.eup %2042  ;;  %v1310_v60 = vadd.f32 1.0, %v2041_v58  ;;  %v1570_v58 = vld [vmem:[#allocation9 + $0x18] sm:$0xff] }
 0x687   :  { %v1316_v62 = vadd.f32 1.0, %v2043_v59  ;;  %v2045_v63 = vpop.eup %2044  ;;  %v1877_v59 = vpack.c.bf16 %v1570_v58, %v1569_v38 }
 0x688   :  { %2048 = vrcp.f32 %v1310_v60  ;;  %v2047_v1 = vpop.eup %2046  ;;  %v1323_v8 = vadd.f32 1.0, %v2045_v63  ;;  %v1571_v60 = vld [vmem:[#allocation9 + $0x20] sm:$0xff] }
 0x689   :  { %2050 = vrcp.f32 %v1316_v62  ;;  %v1572_v62 = vld [vmem:[#allocation9 + $0x28] sm:$0xff] }
 0x68a   :  { %2052 = vrcp.f32 %v1323_v8  ;;  %v1880_v63 = vpack.c.bf16 %v1572_v62, %v1571_v60  ;;  %v1576_v8 = vld [vmem:[#allocation9 + $0x48] sm:$0xff] }
 0x692   :  { %v2049_v23 = vpop.eup %2048 }
 0x693   :  { %v2051_v22 = vpop.eup %2050  ;;  %v1327_v29 = vmul.f32 %v2049_v23, %v2047_v1  ;;  %v1573_v1 = vld [vmem:[#allocation9 + $0x30] sm:$0xff]  ;;  %v1574_v23 = vld [vmem:[#allocation9 + $0x38] sm:$0xff] }
 0x694   :  { %v1326_v51 = vmul.f32 %v2051_v22, %v2742_v32  ;;  %v2053_v17 = vpop.eup %2052  ;;  %v2118_v32 = vld [vmem:[#allocation8 + $0xc0] ss:$16 sps:$4 sm:$0xff]   ;;  %v1883_v22 = vpack.c.bf16 %v1574_v23, %v1573_v1 }
 0x696   :  { %v2830_v18 = vadd.f32 %v1327_v29, %v1326_v51  ;;  %v1575_v29 = vld [vmem:[#allocation9 + $0x40] sm:$0xff] }
 0x697   :  { %v1886_v51 = vpack.c.bf16 %v1576_v8, %v1575_v29 }
 0x698   :  { %2054 = vtanh.f32 %v2830_v18 }
 0x6a2   :  { %v2055_v13 = vpop.eup %2054 }
 0x6a3   :  { %v1330_v27 = vmul.f32 %v2055_v13, %v2053_v17  ;;  %v1578_v17 = vld [vmem:[#allocation9 + $0x58] sm:$0xff]  ;;  %v1579_v13 = vld [vmem:[#allocation9 + $0x60] sm:$0xff] }
 0x6a5   :  { %v1338_v31 = vpack.c.bf16 %v1330_v27, %v1330_v27 }
 0x6a7   :  { %1372 = vmatmul.mubr.bf16.vlgmr.msra.gmra.mrb[40].mxu0 %v1338_v31  ;;  %1413 = vmatmul.mubr.bf16.vlgmr.msra.gmra.mrb[40].mxu1 %v1338_v31  ;;  %v1580_v31 = vld [vmem:[#allocation9 + $0x68] sm:$0xff] }
 0x6a8   :  { %1458 = vmatpush1.bf16.msra.mxu0 %v2745_v34  ;;  %1499 = vmatpush1.bf16.msra.mxu1 %v2748_v35  ;;  %v2122_v34 = vld [vmem:[#allocation8 + $0xe0] ss:$16 sps:$4 sm:$0xff]   ;;  %v2123_v35 = vld [vmem:[#allocation8 + $0xe8] ss:$16 sps:$4 sm:$0xff]  }
 0x6a9   :  { %1459 = vmatprep.subr.bf16.mxu0 %v2751_v3  ;;  %1500 = vmatprep.subr.bf16.mxu1 %v2754_v61 }
 0x6aa   :  { %1489 = vmatprep.mubr.bf16.mxu0 %v2919_v14  ;;  %1530 = vmatprep.mubr.bf16.mxu1 %v2919_v14  ;;  %v2117_v14 = vld [vmem:[#allocation8 + $0xcc] ss:$16 sps:$4 sm:$0xff]  }
 0x6ac   :  { %1460 = vmatpush1.bf16.msra.mxu0 %v2759_v15  ;;  %1501 = vmatpush1.bf16.msra.mxu1 %v2762_v33  ;;  %v2933_v15 = vld [vmem:[#allocation29_spill] sm:$0xff] }
 0x6ad   :  { %1461 = vmatprep.subr.bf16.mxu0 %v2765_v56  ;;  %1502 = vmatprep.subr.bf16.mxu1 %v2768_v11  ;;  %v2934_v56 = vld [vmem:[#allocation31_spill] sm:$0xff] }
 0x6b0   :  { %1462 = vmatpush1.bf16.msra.mxu0 %v2771_v21  ;;  %1503 = vmatpush1.bf16.msra.mxu1 %v2774_v25 }
 0x6b1   :  { %1463 = vmatprep.subr.bf16.mxu0 %v2777_v16  ;;  %1504 = vmatprep.subr.bf16.mxu1 %v2780_v12  ;;  %v2935_v16 = vld [vmem:[#allocation30_spill] sm:$0xff] }
 0x6b4   :  { %1464 = vmatpush1.bf16.msra.mxu0 %v2783_v30  ;;  %1505 = vmatpush1.bf16.msra.mxu1 %v2786_v19  ;;  %v2936_v30 = vld [vmem:[#allocation32_spill] sm:$0xff] }
 0x6b5   :  { %1465 = vmatprep.subr.bf16.mxu0 %v2789_v0  ;;  %1506 = vmatprep.subr.bf16.mxu1 %v2792_v20 }
 0x6b8   :  { %1466 = vmatpush1.bf16.msra.mxu0 %v2795_v24  ;;  %1507 = vmatpush1.bf16.msra.mxu1 %v2798_v26 }
 0x6b9   :  { %1467 = vmatprep.subr.bf16.mxu0 %v2801_v39  ;;  %1508 = vmatprep.subr.bf16.mxu1 %v2804_v40 }
 0x6bc   :  { %1468 = vmatpush1.bf16.msra.mxu0 %v2807_v42  ;;  %1509 = vmatpush1.bf16.msra.mxu1 %v2810_v43 }
 0x6bd   :  { %1469 = vmatprep.subr.bf16.mxu0 %v2813_v44  ;;  %1510 = vmatprep.subr.bf16.mxu1 %v2117_v14  ;;  %v2937_v14 = vmov 0.0  }
 0x6c0   :  { %1470 = vmatpush1.bf16.msra.mxu0 %v2118_v32  ;;  %1511 = vmatpush1.bf16.msra.mxu1 %v2119_v28  ;;  %v1892_v32 = vpack.c.bf16 %v1580_v31, %v1579_v13  ;;  %v1581_v28 = vld [vmem:[#allocation9 + $0x70] sm:$0xff] }
 0x6c1   :  { %1471 = vmatprep.subr.bf16.mxu0 %v2120_v36  ;;  %1512 = vmatprep.subr.bf16.mxu1 %v2121_v45  ;;  %v1582_v36 = vld [vmem:[#allocation9 + $0x78] sm:$0xff] }
 0x6c2   :  { %v1895_v45 = vpack.c.bf16 %v1582_v36, %v1581_v28 }
 0x6c4   :  { %1472 = vmatpush1.bf16.msra.mxu0 %v2122_v34  ;;  %1513 = vmatpush1.bf16.msra.mxu1 %v2123_v35 }
 0x6c5   :  { %1873 = vmatprep.subr.bf16.mxu0 %v2254_v37 }
 0x77a   :  { %v1373_v3 = vpop.f32.mrb[40].mxu0  ;;  %v1414_v61 = vpop.f32.mrb[40].mxu1 }
 0x77b   :  { %v1421_v33 = vadd.f32 %v1373_v3, %v2933_v15  ;;  %v1423_v11 = vadd.f32 %v1414_v61, %v2934_v56  ;;  %v1375_v21 = vpop.f32.mrb[41].mxu0  ;;  %v1416_v25 = vpop.f32.mrb[41].mxu1  ;;  %v2938_v3 = vld [vmem:[#allocation33_spill] sm:$0xff]  ;;  %v2939_v15 = vld [vmem:[#allocation35_spill] sm:$0xff] }
 0x77c   :  { %v1422_v12 = vadd.f32 %v1375_v21, %v2935_v16  ;;  %v1424_v19 = vadd.f32 %v1416_v25, %v2936_v30  ;;  %v1377_v0 = vpop.f32.mrb[42].mxu0  ;;  %v1418_v20 = vpop.f32.mrb[42].mxu1  ;;  %v2940_v21 = vld [vmem:[#allocation34_spill] sm:$0xff] }
 0x77d   :  { %v1750_v24 = vmul.f32 -1.442695, %v1421_v33  ;;  %v1378_v26 = vpop.f32.mrb[43].mxu0  ;;  %v1419_v39 = vpop.f32.mrb[43].mxu1 }
 0x77e   :  { %v1751_v40 = vmul.f32 -1.442695, %v1422_v12  ;;  %v1752_v42 = vmul.f32 -1.442695, %v1424_v19 }
 0x77f   :  { %2056 = vpow2.f32 %v1750_v24 }
 0x780   :  { %2058 = vpow2.f32 %v1751_v40 }
 0x781   :  { %2060 = vpow2.f32 %v1752_v42 }
 0x782   :  { %2062 = vtanh.f32 %v1423_v11 }
 0x789   :  { %v2057_v43 = vpop.eup %2056 }
 0x78a   :  { %v2059_v44 = vpop.eup %2058  ;;  %v1428_v46 = vadd.f32 1.0, %v2057_v43 }
 0x78b   :  { %v1434_v47 = vadd.f32 1.0, %v2059_v44  ;;  %v2061_v48 = vpop.eup %2060 }
 0x78c   :  { %2064 = vrcp.f32 %v1428_v46  ;;  %v2063_v2 = vpop.eup %2062  ;;  %v1441_v5 = vadd.f32 1.0, %v2061_v48 }
 0x78d   :  { %2066 = vrcp.f32 %v1434_v47 }
 0x78e   :  { %2068 = vrcp.f32 %v1441_v5 }
 0x796   :  { %v2065_v49 = vpop.eup %2064 }
 0x797   :  { %v2067_v4 = vpop.eup %2066  ;;  %v1445_v50 = vmul.f32 %v2065_v49, %v2063_v2 }
 0x798   :  { %v1444_v52 = vmul.f32 %v2067_v4, %v2830_v18  ;;  %v2069_v53 = vpop.eup %2068  ;;  %v1577_v18 = vld [vmem:[#allocation9 + $0x50] sm:$0xff] }
 0x799   :  { %v1889_v27 = vpack.c.bf16 %v1578_v17, %v1577_v18 }
 0x79a   :  { %v2863_v6 = vadd.f32 %v1445_v50, %v1444_v52 }
 0x79c   :  { %2070 = vtanh.f32 %v2863_v6 }
 0x7a6   :  { %v2071_v7 = vpop.eup %2070 }
 0x7a7   :  { %v1448_v54 = vmul.f32 %v2071_v7, %v2069_v53  ;;  %v2941_v53 = vlaneseq }
 0x7a9   :  { %v1456_v9 = vpack.c.bf16 %v1448_v54, %v1448_v54  ;;  %v1661_v7 = vand.u32 127, %v2941_v53  ;;  %v1756_v54 = vld [vmem:[%s2893_s5] ss:$0 sm:$0xff]  ;;  %s2212_s5 = scalar_lea.vmem %s1683_s26, 128 }
 0x7aa   :  { %p2213_p4 = scmp.ne.s32.totalorder %s1683_s26, %s2212_s5  ;;  %p2218_p6 = scmp.lt.s32.totalorder %s2212_s5, %s2212_s5 }
 0x7ab   :  { %1490 = vmatmul.mubr.bf16.vlgmr.msra.gmra.mrb[44].mxu0 %v1456_v9  ;;  %1531 = vmatmul.mubr.bf16.vlgmr.msra.gmra.mrb[44].mxu1 %v1456_v9  ;;  %vm1662_vm1 = vcmp.lt.s32.totalorder %v1661_v7, 4 }
 0x7ac   :  { %1875 = vmatpush3.bf16.msra.mxu0 %v1874_v57  ;;  %1806 = vmatprep.mubr.msk.f32.mxu0 %vm2255_vm0, %v2937_v14  ;;  %p2219_p7 = por %p2218_p6, %p2217_p5 }
 0x7ad   :  { %1876 = vmatprep.subr.bf16.mxu0 %v2254_v37 }
 0x7ae   :  { %p2220_p8 = pnand %p2219_p7, %p2213_p4 }
 0x7b0   :  { %1878 = vmatpush3.bf16.msra.mxu0 %v1877_v59 }
 0x7b1   :  { %1879 = vmatprep.subr.bf16.mxu0 %v2254_v37 }
 0x7b4   :  { %1881 = vmatpush3.bf16.msra.mxu0 %v1880_v63 }
 0x7b5   :  { %1882 = vmatprep.subr.bf16.mxu0 %v2254_v37 }
 0x7b8   :  { %1884 = vmatpush3.bf16.msra.mxu0 %v1883_v22 }
 0x7b9   :  { %1885 = vmatprep.subr.bf16.mxu0 %v2254_v37 }
 0x7bc   :  { %1887 = vmatpush3.bf16.msra.mxu0 %v1886_v51 }
 0x7bd   :  { %1888 = vmatprep.subr.bf16.mxu0 %v2254_v37 }
 0x7c0   :  { %1890 = vmatpush3.bf16.msra.mxu0 %v1889_v27 }
 0x7c1   :  { %1891 = vmatprep.subr.bf16.mxu0 %v2254_v37 }
 0x7c4   :  { %1893 = vmatpush3.bf16.msra.mxu0 %v1892_v32 }
 0x7c5   :  { %1894 = vmatprep.subr.bf16.mxu0 %v2254_v37 }
 0x7c8   :  { %1896 = vmatpush3.bf16.msra.mxu0 %v1895_v45 }
 0x87e   :  { %v1491_v34 = vpop.f32.mrb[44].mxu0  ;;  %v1532_v35 = vpop.f32.mrb[44].mxu1 }
 0x87f   :  { %v1539_v61 = vadd.f32 %v1491_v34, %v2938_v3  ;;  %v1541_v33 = vadd.f32 %v1532_v35, %v2939_v15  ;;  %v1493_v56 = vpop.f32.mrb[45].mxu0  ;;  %v1534_v11 = vpop.f32.mrb[45].mxu1 }
 0x880   :  { %v1540_v25 = vadd.f32 %v1493_v56, %v2940_v21  ;;  %v1542_v16 = vadd.f32 %v1534_v11, %v2565_v41  ;;  %v1495_v12 = vpop.f32.mrb[46].mxu0  ;;  %v1536_v30 = vpop.f32.mrb[46].mxu1 }
 0x881   :  { %v1753_v19 = vmul.f32 -1.442695, %v1539_v61  ;;  %v1496_v0 = vpop.f32.mrb[47].mxu0  ;;  %v1537_v20 = vpop.f32.mrb[47].mxu1 }
 0x882   :  { %v1754_v24 = vmul.f32 -1.442695, %v1540_v25  ;;  %v1755_v26 = vmul.f32 -1.442695, %v1542_v16 }
 0x883   :  { %2072 = vpow2.f32 %v1753_v19 }
 0x884   :  { %2074 = vpow2.f32 %v1754_v24 }
 0x885   :  { %2076 = vpow2.f32 %v1755_v26 }
 0x886   :  { %2078 = vtanh.f32 %v1541_v33 }
 0x88d   :  { %v2073_v39 = vpop.eup %2072 }
 0x88e   :  { %v2075_v40 = vpop.eup %2074  ;;  %v1546_v42 = vadd.f32 1.0, %v2073_v39 }
 0x88f   :  { %v1552_v43 = vadd.f32 1.0, %v2075_v40  ;;  %v2077_v44 = vpop.eup %2076 }
 0x890   :  { %2080 = vrcp.f32 %v1546_v42  ;;  %v2079_v46 = vpop.eup %2078  ;;  %v1559_v2 = vadd.f32 1.0, %v2077_v44 }
 0x891   :  { %2082 = vrcp.f32 %v1552_v43 }
 0x892   :  { %2084 = vrcp.f32 %v1559_v2 }
 0x89a   :  { %v2081_v41 = vpop.eup %2080 }
 0x89b   :  { %v2083_v47 = vpop.eup %2082  ;;  %v1563_v48 = vmul.f32 %v2081_v41, %v2079_v46 }
 0x89c   :  { %v1562_v49 = vmul.f32 %v2083_v47, %v2863_v6  ;;  %v2085_v50 = vpop.eup %2084 }
 0x89e   :  { %v1564_v4 = vadd.f32 %v1563_v48, %v1562_v49 }
 0x8a0   :  { %2086 = vtanh.f32 %v1564_v4 }
 0x8aa   :  { %v2087_v5 = vpop.eup %2086 }
 0x8ab   :  { %v1566_v52 = vmul.f32 %v2087_v5, %v2085_v50 }
 0x8ad   :  { %1807 = vmatmul.mubr.f32.vlgmr.msra.gmra.mrb[48].mxu0 %v1566_v52 }
 0x980   :  { %v1656_v9 = vpop.f32.mrb[48].mxu0 }
 0x981   :  { %v1657_v55 = vadd.f32 %v1756_v54, %v1656_v9  ;;  %v1808_v10 = vpop.f32.mrb[49].mxu0 }
 0x983   :  { %v1663_v57 = vsel %vm1662_vm1, %v1657_v55, -1e+30 }
 0x984   :  { %1664 = vmax.xlane.f32.xlu0 %v1663_v57 }
 0xa11   :  { %v1665_v6 = vpop.xlane.xlu0 %1664 }
 0xa12   :  { %v1666_v37 = vsub.f32 %v1663_v57, %v1665_v6 }
 0xa14   :  { %v1667_v38 = vmul.f32 1.442695, %v1666_v37 }
 0xa16   :  { %2088 = vpow2.f32 %v1667_v38 }
 0xa20   :  { %v2089_v58 = vpop.eup %2088 }
 0xa21   :  { %1669 = vadd.xlane.f32.xlu0 %v2089_v58 }
 0xaae   :  { %v1670_v59 = vpop.xlane.xlu0 %1669 }
 0xaaf   :  { %2090 = vlog2.f32 %v1670_v59 }
 0xab9   :  { %v2091_v60 = vpop.eup %2090 }
 0xaba   :  { %v1672_v62 = vmul.f32 0.6931472, %v2091_v60 }
 0xabc   :  { %v1673_v63 = vadd.f32 %v1672_v62, %v1665_v6 }
 0xabe   :  { %v1674_v1 = vsub.f32 %v1663_v57, %v1673_v63 }
 0xac0   :  { %1675 = vst [vmem:[#allocation11] sm:$0xff] %v1674_v1 }
 0xac1   :  { %2223 = shalt.err (!%p2220_p8)
}
 0xac2   :  { %s2224_s29 = scalar_lea.hbm %s2894_s6, 128 }
 0xac3   :  { %p2225_p9 = scmp.ne.s32.totalorder %s2894_s6, %s2224_s29  ;;  %p2228_p10 = scmp.lt.u32.totalorder %s2224_s29, %s2894_s6 }
 0xac5   :  { %p2230_p11 = pnand %p2228_p10, %p2225_p9 }
 0xac7   :  { %2233 = shalt.err (!%p2230_p11)
}
 0xac8   :  { %1685 = dma.vmem_to_hbm [thread:$0]  %s1683_s26, 128, %s2894_s6, [#allocation5]  }
 0xac9   :  { %2240 = dma.done.wait [#allocation5], 128  }
 0xaca   :  { %2241 = vsyncadd [#allocation5], 4294967168 }
 0xacb   :  { %1689 = vsyncpa [#allocation4], 1 }
 0xacc   :  { %1690 = vsyncpa [#allocation7], 1 }
 0xacd   :  { %1691 = vsyncpa [#allocation10], 1 }
 0xace   :  { %1692 = vsyncpa [#allocation5], 1 }

</bundles_post_ra>
